<compile_context>
chip_gen: v7x
topology: tpu7x:2x2x1
jax: 0.10.0
libtpu: 0.0.40
codegen_flags: <defaults>
</compile_context>

<pallas_src>
import functools

import jax
import jax.numpy as jnp
from jax.experimental import pallas as pl
from jax.experimental.pallas import tpu as pltpu


def _decoder_kernel(ids_ref,      # SMEM (B*S,) int32  -- scalar prefetch (token ids)
                    pos_ref,      # VMEM (tm, D) f32   -- positional embeddings tile
                    gamma_ref,    # VMEM (1, D)  f32
                    beta_ref,     # VMEM (1, D)  f32
                    w_ref,        # VMEM (D, tn) bf16  -- vocab projection tile
                    emb_hbm,      # HBM  (vocab, D) f32 (memory_space=pl.ANY)
                    out_ref,      # VMEM (tm, tn) f32
                    tok_buf,      # VMEM scratch (tm, D) f32  -- gathered token embeds
                    h_buf,        # VMEM scratch (tm, D) bf16 -- LN output, reused over j
                    sems):        # DMA semaphores (tm,)
    i = pl.program_id(0)
    j = pl.program_id(1)
    tm = tok_buf.shape[0]

    # Gather + add + LayerNorm only once per row tile; reuse h_buf across all vocab tiles.
    @pl.when(j == 0)
    def _():
        # Fused embedding gather: one row DMA per token in this row tile.
        # Start all DMAs first so they overlap with one another, then wait.
        copies = []
        for r in range(tm):
            tok_id = ids_ref[i * tm + r]
            cp = pltpu.make_async_copy(emb_hbm.at[pl.ds(tok_id, 1)],
                                       tok_buf.at[pl.ds(r, 1)],
                                       sems.at[r])
            cp.start()
            copies.append(cp)
        for cp in copies:
            cp.wait()

        x = tok_buf[...] + pos_ref[...]                      # (tm, D) f32
        c = x - jnp.mean(x, axis=-1, keepdims=True)          # center once
        var = jnp.mean(c * c, axis=-1, keepdims=True)
        h = (c * jax.lax.rsqrt(var + 1e-5)) * gamma_ref[...] + beta_ref[...]
        h_buf[...] = h.astype(h_buf.dtype)                   # single f32 -> bf16 cast

    # Vocab projection: bf16 x bf16 on the MXU, f32 accumulation.
    out_ref[...] = jnp.dot(h_buf[...], w_ref[...],
                           preferred_element_type=jnp.float32)


@functools.partial(jax.jit, static_argnames=("tm", "tn"))
def hf_base_model_forward(src_tokens, params, *, tm=16, tn=256):
    """Equivalent of HfBaseModel.forward(src_tokens) -> (logits, extra)."""
    embed_tokens = params["embed_tokens"]        # (vocab, D) f32
    embed_positions = params["embed_positions"]  # (max_pos, D) f32
    ln_gamma = params["ln_gamma"]                # (1, D) f32
    ln_beta = params["ln_beta"]                  # (1, D) f32
    w_out = params["w_out"]                      # (D, vocab) f32

    B, S = src_tokens.shape
    D = embed_tokens.shape[1]
    V = w_out.shape[1]

    assert S % tm == 0 and (B * S) % tm == 0, "row tile must divide seq and B*S"
    assert V % tn == 0 and tn % 128 == 0, "vocab tile must be lane-dense"
    n_row_tiles = (B * S) // tm
    n_vocab_tiles = V // tn
    n_pos_blocks = S // tm

    ids_flat = src_tokens.reshape(B * S).astype(jnp.int32)
    pos_table = embed_positions[:S]              # (S, D) -- no B-times tiling
    w_bf16 = w_out.astype(jnp.bfloat16)          # bf16 weights: half the DMA bytes

    logits_flat = pl.pallas_call(
        _decoder_kernel,
        out_shape=jax.ShapeDtypeStruct((B * S, V), jnp.float32),
        grid_spec=pltpu.PrefetchScalarGridSpec(
            num_scalar_prefetch=1,
            grid=(n_row_tiles, n_vocab_tiles),
            in_specs=[
                # positional embeddings: block = position tile of this row tile
                pl.BlockSpec((tm, D), lambda i, j, ids: (i % n_pos_blocks, 0)),
                pl.BlockSpec((1, D), lambda i, j, ids: (0, 0)),   # gamma
                pl.BlockSpec((1, D), lambda i, j, ids: (0, 0)),   # beta
                pl.BlockSpec((D, tn), lambda i, j, ids: (0, j)),  # W_out tile
                pl.BlockSpec(memory_space=pl.ANY),                # embed table (HBM)
            ],
            out_specs=pl.BlockSpec((tm, tn), lambda i, j, ids: (i, j)),
            scratch_shapes=[
                pltpu.VMEM((tm, D), jnp.float32),    # gathered token embeddings
                pltpu.VMEM((tm, D), jnp.bfloat16),   # LN output, reused across j
                pltpu.SemaphoreType.DMA((tm,)),      # per-row gather semaphores
            ],
        ),
        compiler_params=pltpu.CompilerParams(
            # i (rows) is independent -> megacore-parallel; j carries h_buf -> arbitrary.
            dimension_semantics=("parallel", "arbitrary")),
    )(ids_flat, pos_table, ln_gamma, ln_beta, w_bf16, embed_tokens)

    logits = logits_flat.reshape(B, S, V)
    # TODO(synk): HfBaseDecoder's model-specific extra outputs (attn, inner states)
    # are not defined by the abstract base; return an empty dict.
    return logits, {}


def _reference_forward(src_tokens, params):
    """Pure-JAX f32 reference for verification."""
    B, S = src_tokens.shape
    tok = jnp.take(params["embed_tokens"], src_tokens, axis=0)
    pos = params["embed_positions"][:S][None, :, :]
    x = tok + pos
    mean = jnp.mean(x, axis=-1, keepdims=True)
    var = jnp.mean(jnp.square(x - mean), axis=-1, keepdims=True)
    h = (x - mean) * jax.lax.rsqrt(var + 1e-5)
    h = h * params["ln_gamma"][0] + params["ln_beta"][0]
    return jnp.einsum("bsd,dv->bsv", h, params["w_out"])


def init_params(key, vocab=512, embed_dim=128, max_positions=64):
    k1, k2, k3 = jax.random.split(key, 3)
    return {
        "embed_tokens": 0.02 * jax.random.normal(k1, (vocab, embed_dim), jnp.float32),
        "embed_positions": 0.02 * jax.random.normal(k2, (max_positions, embed_dim), jnp.float32),
        "ln_gamma": jnp.ones((1, embed_dim), jnp.float32),
        "ln_beta": jnp.zeros((1, embed_dim), jnp.float32),
        "w_out": 0.02 * jax.random.normal(k3, (embed_dim, vocab), jnp.float32),
    }


if __name__ == "__main__":
    key = jax.random.PRNGKey(0)
    # Lane/sublane-aligned small config (D = 128 lanes, tiles multiples of (8, 128)).
    vocab, embed_dim, max_positions = 512, 128, 64
    batch, seq = 2, 16

    params = init_params(key, vocab=vocab, embed_dim=embed_dim,
                         max_positions=max_positions)
    src_tokens = jax.random.randint(jax.random.fold_in(key, 7),
                                    (batch, seq), 0, vocab, dtype=jnp.int32)

    logits, extra = hf_base_model_forward(src_tokens, params, tm=16, tn=256)
    logits = jax.block_until_ready(logits)

    ref = _reference_forward(src_tokens, params)
    assert logits.shape == (batch, seq, vocab), logits.shape
    # Tolerance loosened vs pure-f32 reference because MXU operands are bf16.
    assert jnp.allclose(logits, ref, atol=2e-2, rtol=2e-2), "mismatch vs reference"

    print("KERNEL_OK")
</pallas_src>

<mosaic_0001>
module attributes {stable_mosaic.version = 11 : i64} {
  func.func @_decoder_kernel(%arg0: i32, %arg1: i32, %arg2: memref<32xi32, #tpu.memory_space<smem>>, %arg3: memref<16x128xf32, #tpu.memory_space<vmem>>, %arg4: memref<1x128xf32, #tpu.memory_space<vmem>>, %arg5: memref<1x128xf32, #tpu.memory_space<vmem>>, %arg6: memref<128x256xbf16, #tpu.memory_space<vmem>>, %arg7: memref<512x128xf32, #tpu.memory_space<any>>, %arg8: memref<16x256xf32, #tpu.memory_space<vmem>>, %arg9: memref<16x128xf32, #tpu.memory_space<vmem>>, %arg10: memref<16x128xbf16, #tpu.memory_space<vmem>>, %arg11: memref<16x!tpu.dma_semaphore, #tpu.memory_space<semaphore_mem>>) attributes {dimension_semantics = [#tpu.dimension_semantics<parallel>, #tpu.dimension_semantics<arbitrary>], iteration_bounds = array<i64: 2, 2>, scalar_prefetch = 1 : i64, scratch_operands = 3 : i64, tpu.core_type = #tpu.core_type<tc>, window_params = [{transform_indices = @transform_0, window_bounds = array<i64: 16, 128>}, {pipeline_mode = #tpu.pipeline_mode<synchronous>, transform_indices = @transform_1, window_bounds = array<i64: 1, 128>}, {pipeline_mode = #tpu.pipeline_mode<synchronous>, transform_indices = @transform_2, window_bounds = array<i64: 1, 128>}, {transform_indices = @transform_3, window_bounds = array<i64: 128, 256>}, {}, {transform_indices = @transform_5, window_bounds = array<i64: 16, 256>}]} {
    %c0_i32 = arith.constant 0 : i32
    %0 = arith.cmpi eq, %arg1, %c0_i32 : i32
    %1 = arith.extui %0 : i1 to i32
    %c0_i32_0 = arith.constant 0 : i32
    %2 = arith.cmpi ne, %1, %c0_i32_0 : i32
    scf.if %2 {
      %c16_i32 = arith.constant 16 : i32
      %7 = arith.muli %arg0, %c16_i32 : i32
      %c0_i32_6 = arith.constant 0 : i32
      %8 = arith.addi %7, %c0_i32_6 : i32
      %9 = arith.index_cast %8 : i32 to index
      %10 = memref.load %arg2[%9] : memref<32xi32, #tpu.memory_space<smem>>
      %c0_i32_7 = arith.constant 0 : i32
      %c0_i32_8 = arith.constant 0 : i32
      %11 = tpu.memref_slice %arg7[%10, %c0_i32_8] : memref<512x128xf32, #tpu.memory_space<any>> -> memref<1x128xf32, #tpu.memory_space<any>>
      %c0_i32_9 = arith.constant 0 : i32
      %c0_i32_10 = arith.constant 0 : i32
      %12 = tpu.memref_slice %arg9[%c0_i32_9, %c0_i32_10] : memref<16x128xf32, #tpu.memory_space<vmem>> -> memref<1x128xf32, #tpu.memory_space<vmem>>
      %13 = tpu.memref_slice %arg11[%c0_i32_7] : memref<16x!tpu.dma_semaphore, #tpu.memory_space<semaphore_mem>> -> memref<1x!tpu.dma_semaphore, #tpu.memory_space<semaphore_mem>>
      %14 = tpu.memref_squeeze %13 : memref<1x!tpu.dma_semaphore, #tpu.memory_space<semaphore_mem>> -> memref<!tpu.dma_semaphore, #tpu.memory_space<semaphore_mem>>
      tpu.enqueue_dma source(%11 : memref<1x128xf32, #tpu.memory_space<any>>) target(%12 : memref<1x128xf32, #tpu.memory_space<vmem>>) target_semaphore(%14 : memref<!tpu.dma_semaphore, #tpu.memory_space<semaphore_mem>>)
      %c16_i32_11 = arith.constant 16 : i32
      %15 = arith.muli %arg0, %c16_i32_11 : i32
      %c1_i32 = arith.constant 1 : i32
      %16 = arith.addi %15, %c1_i32 : i32
      %17 = arith.index_cast %16 : i32 to index
      %18 = memref.load %arg2[%17] : memref<32xi32, #tpu.memory_space<smem>>
      %c1_i32_12 = arith.constant 1 : i32
      %c0_i32_13 = arith.constant 0 : i32
      %19 = tpu.memref_slice %arg7[%18, %c0_i32_13] : memref<512x128xf32, #tpu.memory_space<any>> -> memref<1x128xf32, #tpu.memory_space<any>>
      %c1_i32_14 = arith.constant 1 : i32
      %c0_i32_15 = arith.constant 0 : i32
      %20 = tpu.memref_slice %arg9[%c1_i32_14, %c0_i32_15] : memref<16x128xf32, #tpu.memory_space<vmem>> -> memref<1x128xf32, #tpu.memory_space<vmem>>
      %21 = tpu.memref_slice %arg11[%c1_i32_12] : memref<16x!tpu.dma_semaphore, #tpu.memory_space<semaphore_mem>> -> memref<1x!tpu.dma_semaphore, #tpu.memory_space<semaphore_mem>>
      %22 = tpu.memref_squeeze %21 : memref<1x!tpu.dma_semaphore, #tpu.memory_space<semaphore_mem>> -> memref<!tpu.dma_semaphore, #tpu.memory_space<semaphore_mem>>
      tpu.enqueue_dma source(%19 : memref<1x128xf32, #tpu.memory_space<any>>) target(%20 : memref<1x128xf32, #tpu.memory_space<vmem>>) target_semaphore(%22 : memref<!tpu.dma_semaphore, #tpu.memory_space<semaphore_mem>>)
      %c16_i32_16 = arith.constant 16 : i32
      %23 = arith.muli %arg0, %c16_i32_16 : i32
      %c2_i32 = arith.constant 2 : i32
      %24 = arith.addi %23, %c2_i32 : i32
      %25 = arith.index_cast %24 : i32 to index
      %26 = memref.load %arg2[%25] : memref<32xi32, #tpu.memory_space<smem>>
      %c2_i32_17 = arith.constant 2 : i32
      %c0_i32_18 = arith.constant 0 : i32
      %27 = tpu.memref_slice %arg7[%26, %c0_i32_18] : memref<512x128xf32, #tpu.memory_space<any>> -> memref<1x128xf32, #tpu.memory_space<any>>
      %c2_i32_19 = arith.constant 2 : i32
      %c0_i32_20 = arith.constant 0 : i32
      %28 = tpu.memref_slice %arg9[%c2_i32_19, %c0_i32_20] : memref<16x128xf32, #tpu.memory_space<vmem>> -> memref<1x128xf32, #tpu.memory_space<vmem>>
      %29 = tpu.memref_slice %arg11[%c2_i32_17] : memref<16x!tpu.dma_semaphore, #tpu.memory_space<semaphore_mem>> -> memref<1x!tpu.dma_semaphore, #tpu.memory_space<semaphore_mem>>
      %30 = tpu.memref_squeeze %29 : memref<1x!tpu.dma_semaphore, #tpu.memory_space<semaphore_mem>> -> memref<!tpu.dma_semaphore, #tpu.memory_space<semaphore_mem>>
      tpu.enqueue_dma source(%27 : memref<1x128xf32, #tpu.memory_space<any>>) target(%28 : memref<1x128xf32, #tpu.memory_space<vmem>>) target_semaphore(%30 : memref<!tpu.dma_semaphore, #tpu.memory_space<semaphore_mem>>)
      %c16_i32_21 = arith.constant 16 : i32
      %31 = arith.muli %arg0, %c16_i32_21 : i32
      %c3_i32 = arith.constant 3 : i32
      %32 = arith.addi %31, %c3_i32 : i32
      %33 = arith.index_cast %32 : i32 to index
      %34 = memref.load %arg2[%33] : memref<32xi32, #tpu.memory_space<smem>>
      %c3_i32_22 = arith.constant 3 : i32
      %c0_i32_23 = arith.constant 0 : i32
      %35 = tpu.memref_slice %arg7[%34, %c0_i32_23] : memref<512x128xf32, #tpu.memory_space<any>> -> memref<1x128xf32, #tpu.memory_space<any>>
      %c3_i32_24 = arith.constant 3 : i32
      %c0_i32_25 = arith.constant 0 : i32
      %36 = tpu.memref_slice %arg9[%c3_i32_24, %c0_i32_25] : memref<16x128xf32, #tpu.memory_space<vmem>> -> memref<1x128xf32, #tpu.memory_space<vmem>>
      %37 = tpu.memref_slice %arg11[%c3_i32_22] : memref<16x!tpu.dma_semaphore, #tpu.memory_space<semaphore_mem>> -> memref<1x!tpu.dma_semaphore, #tpu.memory_space<semaphore_mem>>
      %38 = tpu.memref_squeeze %37 : memref<1x!tpu.dma_semaphore, #tpu.memory_space<semaphore_mem>> -> memref<!tpu.dma_semaphore, #tpu.memory_space<semaphore_mem>>
      tpu.enqueue_dma source(%35 : memref<1x128xf32, #tpu.memory_space<any>>) target(%36 : memref<1x128xf32, #tpu.memory_space<vmem>>) target_semaphore(%38 : memref<!tpu.dma_semaphore, #tpu.memory_space<semaphore_mem>>)
      %c16_i32_26 = arith.constant 16 : i32
      %39 = arith.muli %arg0, %c16_i32_26 : i32
      %c4_i32 = arith.constant 4 : i32
      %40 = arith.addi %39, %c4_i32 : i32
      %41 = arith.index_cast %40 : i32 to index
      %42 = memref.load %arg2[%41] : memref<32xi32, #tpu.memory_space<smem>>
      %c4_i32_27 = arith.constant 4 : i32
      %c0_i32_28 = arith.constant 0 : i32
      %43 = tpu.memref_slice %arg7[%42, %c0_i32_28] : memref<512x128xf32, #tpu.memory_space<any>> -> memref<1x128xf32, #tpu.memory_space<any>>
      %c4_i32_29 = arith.constant 4 : i32
      %c0_i32_30 = arith.constant 0 : i32
      %44 = tpu.memref_slice %arg9[%c4_i32_29, %c0_i32_30] : memref<16x128xf32, #tpu.memory_space<vmem>> -> memref<1x128xf32, #tpu.memory_space<vmem>>
      %45 = tpu.memref_slice %arg11[%c4_i32_27] : memref<16x!tpu.dma_semaphore, #tpu.memory_space<semaphore_mem>> -> memref<1x!tpu.dma_semaphore, #tpu.memory_space<semaphore_mem>>
      %46 = tpu.memref_squeeze %45 : memref<1x!tpu.dma_semaphore, #tpu.memory_space<semaphore_mem>> -> memref<!tpu.dma_semaphore, #tpu.memory_space<semaphore_mem>>
      tpu.enqueue_dma source(%43 : memref<1x128xf32, #tpu.memory_space<any>>) target(%44 : memref<1x128xf32, #tpu.memory_space<vmem>>) target_semaphore(%46 : memref<!tpu.dma_semaphore, #tpu.memory_space<semaphore_mem>>)
      %c16_i32_31 = arith.constant 16 : i32
      %47 = arith.muli %arg0, %c16_i32_31 : i32
      %c5_i32 = arith.constant 5 : i32
      %48 = arith.addi %47, %c5_i32 : i32
      %49 = arith.index_cast %48 : i32 to index
      %50 = memref.load %arg2[%49] : memref<32xi32, #tpu.memory_space<smem>>
      %c5_i32_32 = arith.constant 5 : i32
      %c0_i32_33 = arith.constant 0 : i32
      %51 = tpu.memref_slice %arg7[%50, %c0_i32_33] : memref<512x128xf32, #tpu.memory_space<any>> -> memref<1x128xf32, #tpu.memory_space<any>>
      %c5_i32_34 = arith.constant 5 : i32
      %c0_i32_35 = arith.constant 0 : i32
      %52 = tpu.memref_slice %arg9[%c5_i32_34, %c0_i32_35] : memref<16x128xf32, #tpu.memory_space<vmem>> -> memref<1x128xf32, #tpu.memory_space<vmem>>
      %53 = tpu.memref_slice %arg11[%c5_i32_32] : memref<16x!tpu.dma_semaphore, #tpu.memory_space<semaphore_mem>> -> memref<1x!tpu.dma_semaphore, #tpu.memory_space<semaphore_mem>>
      %54 = tpu.memref_squeeze %53 : memref<1x!tpu.dma_semaphore, #tpu.memory_space<semaphore_mem>> -> memref<!tpu.dma_semaphore, #tpu.memory_space<semaphore_mem>>
      tpu.enqueue_dma source(%51 : memref<1x128xf32, #tpu.memory_space<any>>) target(%52 : memref<1x128xf32, #tpu.memory_space<vmem>>) target_semaphore(%54 : memref<!tpu.dma_semaphore, #tpu.memory_space<semaphore_mem>>)
      %c16_i32_36 = arith.constant 16 : i32
      %55 = arith.muli %arg0, %c16_i32_36 : i32
      %c6_i32 = arith.constant 6 : i32
      %56 = arith.addi %55, %c6_i32 : i32
      %57 = arith.index_cast %56 : i32 to index
      %58 = memref.load %arg2[%57] : memref<32xi32, #tpu.memory_space<smem>>
      %c6_i32_37 = arith.constant 6 : i32
      %c0_i32_38 = arith.constant 0 : i32
      %59 = tpu.memref_slice %arg7[%58, %c0_i32_38] : memref<512x128xf32, #tpu.memory_space<any>> -> memref<1x128xf32, #tpu.memory_space<any>>
      %c6_i32_39 = arith.constant 6 : i32
      %c0_i32_40 = arith.constant 0 : i32
      %60 = tpu.memref_slice %arg9[%c6_i32_39, %c0_i32_40] : memref<16x128xf32, #tpu.memory_space<vmem>> -> memref<1x128xf32, #tpu.memory_space<vmem>>
      %61 = tpu.memref_slice %arg11[%c6_i32_37] : memref<16x!tpu.dma_semaphore, #tpu.memory_space<semaphore_mem>> -> memref<1x!tpu.dma_semaphore, #tpu.memory_space<semaphore_mem>>
      %62 = tpu.memref_squeeze %61 : memref<1x!tpu.dma_semaphore, #tpu.memory_space<semaphore_mem>> -> memref<!tpu.dma_semaphore, #tpu.memory_space<semaphore_mem>>
      tpu.enqueue_dma source(%59 : memref<1x128xf32, #tpu.memory_space<any>>) target(%60 : memref<1x128xf32, #tpu.memory_space<vmem>>) target_semaphore(%62 : memref<!tpu.dma_semaphore, #tpu.memory_space<semaphore_mem>>)
      %c16_i32_41 = arith.constant 16 : i32
      %63 = arith.muli %arg0, %c16_i32_41 : i32
      %c7_i32 = arith.constant 7 : i32
      %64 = arith.addi %63, %c7_i32 : i32
      %65 = arith.index_cast %64 : i32 to index
      %66 = memref.load %arg2[%65] : memref<32xi32, #tpu.memory_space<smem>>
      %c7_i32_42 = arith.constant 7 : i32
      %c0_i32_43 = arith.constant 0 : i32
      %67 = tpu.memref_slice %arg7[%66, %c0_i32_43] : memref<512x128xf32, #tpu.memory_space<any>> -> memref<1x128xf32, #tpu.memory_space<any>>
      %c7_i32_44 = arith.constant 7 : i32
      %c0_i32_45 = arith.constant 0 : i32
      %68 = tpu.memref_slice %arg9[%c7_i32_44, %c0_i32_45] : memref<16x128xf32, #tpu.memory_space<vmem>> -> memref<1x128xf32, #tpu.memory_space<vmem>>
      %69 = tpu.memref_slice %arg11[%c7_i32_42] : memref<16x!tpu.dma_semaphore, #tpu.memory_space<semaphore_mem>> -> memref<1x!tpu.dma_semaphore, #tpu.memory_space<semaphore_mem>>
      %70 = tpu.memref_squeeze %69 : memref<1x!tpu.dma_semaphore, #tpu.memory_space<semaphore_mem>> -> memref<!tpu.dma_semaphore, #tpu.memory_space<semaphore_mem>>
      tpu.enqueue_dma source(%67 : memref<1x128xf32, #tpu.memory_space<any>>) target(%68 : memref<1x128xf32, #tpu.memory_space<vmem>>) target_semaphore(%70 : memref<!tpu.dma_semaphore, #tpu.memory_space<semaphore_mem>>)
      %c16_i32_46 = arith.constant 16 : i32
      %71 = arith.muli %arg0, %c16_i32_46 : i32
      %c8_i32 = arith.constant 8 : i32
      %72 = arith.addi %71, %c8_i32 : i32
      %73 = arith.index_cast %72 : i32 to index
      %74 = memref.load %arg2[%73] : memref<32xi32, #tpu.memory_space<smem>>
      %c8_i32_47 = arith.constant 8 : i32
      %c0_i32_48 = arith.constant 0 : i32
      %75 = tpu.memref_slice %arg7[%74, %c0_i32_48] : memref<512x128xf32, #tpu.memory_space<any>> -> memref<1x128xf32, #tpu.memory_space<any>>
      %c8_i32_49 = arith.constant 8 : i32
      %c0_i32_50 = arith.constant 0 : i32
      %76 = tpu.memref_slice %arg9[%c8_i32_49, %c0_i32_50] : memref<16x128xf32, #tpu.memory_space<vmem>> -> memref<1x128xf32, #tpu.memory_space<vmem>>
      %77 = tpu.memref_slice %arg11[%c8_i32_47] : memref<16x!tpu.dma_semaphore, #tpu.memory_space<semaphore_mem>> -> memref<1x!tpu.dma_semaphore, #tpu.memory_space<semaphore_mem>>
      %78 = tpu.memref_squeeze %77 : memref<1x!tpu.dma_semaphore, #tpu.memory_space<semaphore_mem>> -> memref<!tpu.dma_semaphore, #tpu.memory_space<semaphore_mem>>
      tpu.enqueue_dma source(%75 : memref<1x128xf32, #tpu.memory_space<any>>) target(%76 : memref<1x128xf32, #tpu.memory_space<vmem>>) target_semaphore(%78 : memref<!tpu.dma_semaphore, #tpu.memory_space<semaphore_mem>>)
      %c16_i32_51 = arith.constant 16 : i32
      %79 = arith.muli %arg0, %c16_i32_51 : i32
      %c9_i32 = arith.constant 9 : i32
      %80 = arith.addi %79, %c9_i32 : i32
      %81 = arith.index_cast %80 : i32 to index
      %82 = memref.load %arg2[%81] : memref<32xi32, #tpu.memory_space<smem>>
      %c9_i32_52 = arith.constant 9 : i32
      %c0_i32_53 = arith.constant 0 : i32
      %83 = tpu.memref_slice %arg7[%82, %c0_i32_53] : memref<512x128xf32, #tpu.memory_space<any>> -> memref<1x128xf32, #tpu.memory_space<any>>
      %c9_i32_54 = arith.constant 9 : i32
      %c0_i32_55 = arith.constant 0 : i32
      %84 = tpu.memref_slice %arg9[%c9_i32_54, %c0_i32_55] : memref<16x128xf32, #tpu.memory_space<vmem>> -> memref<1x128xf32, #tpu.memory_space<vmem>>
      %85 = tpu.memref_slice %arg11[%c9_i32_52] : memref<16x!tpu.dma_semaphore, #tpu.memory_space<semaphore_mem>> -> memref<1x!tpu.dma_semaphore, #tpu.memory_space<semaphore_mem>>
      %86 = tpu.memref_squeeze %85 : memref<1x!tpu.dma_semaphore, #tpu.memory_space<semaphore_mem>> -> memref<!tpu.dma_semaphore, #tpu.memory_space<semaphore_mem>>
      tpu.enqueue_dma source(%83 : memref<1x128xf32, #tpu.memory_space<any>>) target(%84 : memref<1x128xf32, #tpu.memory_space<vmem>>) target_semaphore(%86 : memref<!tpu.dma_semaphore, #tpu.memory_space<semaphore_mem>>)
      %c16_i32_56 = arith.constant 16 : i32
      %87 = arith.muli %arg0, %c16_i32_56 : i32
      %c10_i32 = arith.constant 10 : i32
      %88 = arith.addi %87, %c10_i32 : i32
      %89 = arith.index_cast %88 : i32 to index
      %90 = memref.load %arg2[%89] : memref<32xi32, #tpu.memory_space<smem>>
      %c10_i32_57 = arith.constant 10 : i32
      %c0_i32_58 = arith.constant 0 : i32
      %91 = tpu.memref_slice %arg7[%90, %c0_i32_58] : memref<512x128xf32, #tpu.memory_space<any>> -> memref<1x128xf32, #tpu.memory_space<any>>
      %c10_i32_59 = arith.constant 10 : i32
      %c0_i32_60 = arith.constant 0 : i32
      %92 = tpu.memref_slice %arg9[%c10_i32_59, %c0_i32_60] : memref<16x128xf32, #tpu.memory_space<vmem>> -> memref<1x128xf32, #tpu.memory_space<vmem>>
      %93 = tpu.memref_slice %arg11[%c10_i32_57] : memref<16x!tpu.dma_semaphore, #tpu.memory_space<semaphore_mem>> -> memref<1x!tpu.dma_semaphore, #tpu.memory_space<semaphore_mem>>
      %94 = tpu.memref_squeeze %93 : memref<1x!tpu.dma_semaphore, #tpu.memory_space<semaphore_mem>> -> memref<!tpu.dma_semaphore, #tpu.memory_space<semaphore_mem>>
      tpu.enqueue_dma source(%91 : memref<1x128xf32, #tpu.memory_space<any>>) target(%92 : memref<1x128xf32, #tpu.memory_space<vmem>>) target_semaphore(%94 : memref<!tpu.dma_semaphore, #tpu.memory_space<semaphore_mem>>)
      %c16_i32_61 = arith.constant 16 : i32
      %95 = arith.muli %arg0, %c16_i32_61 : i32
      %c11_i32 = arith.constant 11 : i32
      %96 = arith.addi %95, %c11_i32 : i32
      %97 = arith.index_cast %96 : i32 to index
      %98 = memref.load %arg2[%97] : memref<32xi32, #tpu.memory_space<smem>>
      %c11_i32_62 = arith.constant 11 : i32
      %c0_i32_63 = arith.constant 0 : i32
      %99 = tpu.memref_slice %arg7[%98, %c0_i32_63] : memref<512x128xf32, #tpu.memory_space<any>> -> memref<1x128xf32, #tpu.memory_space<any>>
      %c11_i32_64 = arith.constant 11 : i32
      %c0_i32_65 = arith.constant 0 : i32
      %100 = tpu.memref_slice %arg9[%c11_i32_64, %c0_i32_65] : memref<16x128xf32, #tpu.memory_space<vmem>> -> memref<1x128xf32, #tpu.memory_space<vmem>>
      %101 = tpu.memref_slice %arg11[%c11_i32_62] : memref<16x!tpu.dma_semaphore, #tpu.memory_space<semaphore_mem>> -> memref<1x!tpu.dma_semaphore, #tpu.memory_space<semaphore_mem>>
      %102 = tpu.memref_squeeze %101 : memref<1x!tpu.dma_semaphore, #tpu.memory_space<semaphore_mem>> -> memref<!tpu.dma_semaphore, #tpu.memory_space<semaphore_mem>>
      tpu.enqueue_dma source(%99 : memref<1x128xf32, #tpu.memory_space<any>>) target(%100 : memref<1x128xf32, #tpu.memory_space<vmem>>) target_semaphore(%102 : memref<!tpu.dma_semaphore, #tpu.memory_space<semaphore_mem>>)
      %c16_i32_66 = arith.constant 16 : i32
      %103 = arith.muli %arg0, %c16_i32_66 : i32
      %c12_i32 = arith.constant 12 : i32
      %104 = arith.addi %103, %c12_i32 : i32
      %105 = arith.index_cast %104 : i32 to index
      %106 = memref.load %arg2[%105] : memref<32xi32, #tpu.memory_space<smem>>
      %c12_i32_67 = arith.constant 12 : i32
      %c0_i32_68 = arith.constant 0 : i32
      %107 = tpu.memref_slice %arg7[%106, %c0_i32_68] : memref<512x128xf32, #tpu.memory_space<any>> -> memref<1x128xf32, #tpu.memory_space<any>>
      %c12_i32_69 = arith.constant 12 : i32
      %c0_i32_70 = arith.constant 0 : i32
      %108 = tpu.memref_slice %arg9[%c12_i32_69, %c0_i32_70] : memref<16x128xf32, #tpu.memory_space<vmem>> -> memref<1x128xf32, #tpu.memory_space<vmem>>
      %109 = tpu.memref_slice %arg11[%c12_i32_67] : memref<16x!tpu.dma_semaphore, #tpu.memory_space<semaphore_mem>> -> memref<1x!tpu.dma_semaphore, #tpu.memory_space<semaphore_mem>>
      %110 = tpu.memref_squeeze %109 : memref<1x!tpu.dma_semaphore, #tpu.memory_space<semaphore_mem>> -> memref<!tpu.dma_semaphore, #tpu.memory_space<semaphore_mem>>
      tpu.enqueue_dma source(%107 : memref<1x128xf32, #tpu.memory_space<any>>) target(%108 : memref<1x128xf32, #tpu.memory_space<vmem>>) target_semaphore(%110 : memref<!tpu.dma_semaphore, #tpu.memory_space<semaphore_mem>>)
      %c16_i32_71 = arith.constant 16 : i32
      %111 = arith.muli %arg0, %c16_i32_71 : i32
      %c13_i32 = arith.constant 13 : i32
      %112 = arith.addi %111, %c13_i32 : i32
      %113 = arith.index_cast %112 : i32 to index
      %114 = memref.load %arg2[%113] : memref<32xi32, #tpu.memory_space<smem>>
      %c13_i32_72 = arith.constant 13 : i32
      %c0_i32_73 = arith.constant 0 : i32
      %115 = tpu.memref_slice %arg7[%114, %c0_i32_73] : memref<512x128xf32, #tpu.memory_space<any>> -> memref<1x128xf32, #tpu.memory_space<any>>
      %c13_i32_74 = arith.constant 13 : i32
      %c0_i32_75 = arith.constant 0 : i32
      %116 = tpu.memref_slice %arg9[%c13_i32_74, %c0_i32_75] : memref<16x128xf32, #tpu.memory_space<vmem>> -> memref<1x128xf32, #tpu.memory_space<vmem>>
      %117 = tpu.memref_slice %arg11[%c13_i32_72] : memref<16x!tpu.dma_semaphore, #tpu.memory_space<semaphore_mem>> -> memref<1x!tpu.dma_semaphore, #tpu.memory_space<semaphore_mem>>
      %118 = tpu.memref_squeeze %117 : memref<1x!tpu.dma_semaphore, #tpu.memory_space<semaphore_mem>> -> memref<!tpu.dma_semaphore, #tpu.memory_space<semaphore_mem>>
      tpu.enqueue_dma source(%115 : memref<1x128xf32, #tpu.memory_space<any>>) target(%116 : memref<1x128xf32, #tpu.memory_space<vmem>>) target_semaphore(%118 : memref<!tpu.dma_semaphore, #tpu.memory_space<semaphore_mem>>)
      %c16_i32_76 = arith.constant 16 : i32
      %119 = arith.muli %arg0, %c16_i32_76 : i32
      %c14_i32 = arith.constant 14 : i32
      %120 = arith.addi %119, %c14_i32 : i32
      %121 = arith.index_cast %120 : i32 to index
      %122 = memref.load %arg2[%121] : memref<32xi32, #tpu.memory_space<smem>>
      %c14_i32_77 = arith.constant 14 : i32
      %c0_i32_78 = arith.constant 0 : i32
      %123 = tpu.memref_slice %arg7[%122, %c0_i32_78] : memref<512x128xf32, #tpu.memory_space<any>> -> memref<1x128xf32, #tpu.memory_space<any>>
      %c14_i32_79 = arith.constant 14 : i32
      %c0_i32_80 = arith.constant 0 : i32
      %124 = tpu.memref_slice %arg9[%c14_i32_79, %c0_i32_80] : memref<16x128xf32, #tpu.memory_space<vmem>> -> memref<1x128xf32, #tpu.memory_space<vmem>>
      %125 = tpu.memref_slice %arg11[%c14_i32_77] : memref<16x!tpu.dma_semaphore, #tpu.memory_space<semaphore_mem>> -> memref<1x!tpu.dma_semaphore, #tpu.memory_space<semaphore_mem>>
      %126 = tpu.memref_squeeze %125 : memref<1x!tpu.dma_semaphore, #tpu.memory_space<semaphore_mem>> -> memref<!tpu.dma_semaphore, #tpu.memory_space<semaphore_mem>>
      tpu.enqueue_dma source(%123 : memref<1x128xf32, #tpu.memory_space<any>>) target(%124 : memref<1x128xf32, #tpu.memory_space<vmem>>) target_semaphore(%126 : memref<!tpu.dma_semaphore, #tpu.memory_space<semaphore_mem>>)
      %c16_i32_81 = arith.constant 16 : i32
      %127 = arith.muli %arg0, %c16_i32_81 : i32
      %c15_i32 = arith.constant 15 : i32
      %128 = arith.addi %127, %c15_i32 : i32
      %129 = arith.index_cast %128 : i32 to index
      %130 = memref.load %arg2[%129] : memref<32xi32, #tpu.memory_space<smem>>
      %c15_i32_82 = arith.constant 15 : i32
      %c0_i32_83 = arith.constant 0 : i32
      %131 = tpu.memref_slice %arg7[%130, %c0_i32_83] : memref<512x128xf32, #tpu.memory_space<any>> -> memref<1x128xf32, #tpu.memory_space<any>>
      %c15_i32_84 = arith.constant 15 : i32
      %c0_i32_85 = arith.constant 0 : i32
      %132 = tpu.memref_slice %arg9[%c15_i32_84, %c0_i32_85] : memref<16x128xf32, #tpu.memory_space<vmem>> -> memref<1x128xf32, #tpu.memory_space<vmem>>
      %133 = tpu.memref_slice %arg11[%c15_i32_82] : memref<16x!tpu.dma_semaphore, #tpu.memory_space<semaphore_mem>> -> memref<1x!tpu.dma_semaphore, #tpu.memory_space<semaphore_mem>>
      %134 = tpu.memref_squeeze %133 : memref<1x!tpu.dma_semaphore, #tpu.memory_space<semaphore_mem>> -> memref<!tpu.dma_semaphore, #tpu.memory_space<semaphore_mem>>
      tpu.enqueue_dma source(%131 : memref<1x128xf32, #tpu.memory_space<any>>) target(%132 : memref<1x128xf32, #tpu.memory_space<vmem>>) target_semaphore(%134 : memref<!tpu.dma_semaphore, #tpu.memory_space<semaphore_mem>>)
      %c0_i32_86 = arith.constant 0 : i32
      %c0_i32_87 = arith.constant 0 : i32
      %135 = tpu.memref_slice %arg7[%10, %c0_i32_87] : memref<512x128xf32, #tpu.memory_space<any>> -> memref<1x128xf32, #tpu.memory_space<any>>
      %c0_i32_88 = arith.constant 0 : i32
      %c0_i32_89 = arith.constant 0 : i32
      %136 = tpu.memref_slice %arg9[%c0_i32_88, %c0_i32_89] : memref<16x128xf32, #tpu.memory_space<vmem>> -> memref<1x128xf32, #tpu.memory_space<vmem>>
      %137 = tpu.memref_slice %arg11[%c0_i32_86] : memref<16x!tpu.dma_semaphore, #tpu.memory_space<semaphore_mem>> -> memref<1x!tpu.dma_semaphore, #tpu.memory_space<semaphore_mem>>
      %138 = tpu.memref_squeeze %137 : memref<1x!tpu.dma_semaphore, #tpu.memory_space<semaphore_mem>> -> memref<!tpu.dma_semaphore, #tpu.memory_space<semaphore_mem>>
      tpu.wait_dma2 semaphore(%138 : memref<!tpu.dma_semaphore, #tpu.memory_space<semaphore_mem>>) src(%135 : memref<1x128xf32, #tpu.memory_space<any>>) dst(%136 : memref<1x128xf32, #tpu.memory_space<vmem>>)
      %c1_i32_90 = arith.constant 1 : i32
      %c0_i32_91 = arith.constant 0 : i32
      %139 = tpu.memref_slice %arg7[%18, %c0_i32_91] : memref<512x128xf32, #tpu.memory_space<any>> -> memref<1x128xf32, #tpu.memory_space<any>>
      %c1_i32_92 = arith.constant 1 : i32
      %c0_i32_93 = arith.constant 0 : i32
      %140 = tpu.memref_slice %arg9[%c1_i32_92, %c0_i32_93] : memref<16x128xf32, #tpu.memory_space<vmem>> -> memref<1x128xf32, #tpu.memory_space<vmem>>
      %141 = tpu.memref_slice %arg11[%c1_i32_90] : memref<16x!tpu.dma_semaphore, #tpu.memory_space<semaphore_mem>> -> memref<1x!tpu.dma_semaphore, #tpu.memory_space<semaphore_mem>>
      %142 = tpu.memref_squeeze %141 : memref<1x!tpu.dma_semaphore, #tpu.memory_space<semaphore_mem>> -> memref<!tpu.dma_semaphore, #tpu.memory_space<semaphore_mem>>
      tpu.wait_dma2 semaphore(%142 : memref<!tpu.dma_semaphore, #tpu.memory_space<semaphore_mem>>) src(%139 : memref<1x128xf32, #tpu.memory_space<any>>) dst(%140 : memref<1x128xf32, #tpu.memory_space<vmem>>)
      %c2_i32_94 = arith.constant 2 : i32
      %c0_i32_95 = arith.constant 0 : i32
      %143 = tpu.memref_slice %arg7[%26, %c0_i32_95] : memref<512x128xf32, #tpu.memory_space<any>> -> memref<1x128xf32, #tpu.memory_space<any>>
      %c2_i32_96 = arith.constant 2 : i32
      %c0_i32_97 = arith.constant 0 : i32
      %144 = tpu.memref_slice %arg9[%c2_i32_96, %c0_i32_97] : memref<16x128xf32, #tpu.memory_space<vmem>> -> memref<1x128xf32, #tpu.memory_space<vmem>>
      %145 = tpu.memref_slice %arg11[%c2_i32_94] : memref<16x!tpu.dma_semaphore, #tpu.memory_space<semaphore_mem>> -> memref<1x!tpu.dma_semaphore, #tpu.memory_space<semaphore_mem>>
      %146 = tpu.memref_squeeze %145 : memref<1x!tpu.dma_semaphore, #tpu.memory_space<semaphore_mem>> -> memref<!tpu.dma_semaphore, #tpu.memory_space<semaphore_mem>>
      tpu.wait_dma2 semaphore(%146 : memref<!tpu.dma_semaphore, #tpu.memory_space<semaphore_mem>>) src(%143 : memref<1x128xf32, #tpu.memory_space<any>>) dst(%144 : memref<1x128xf32, #tpu.memory_space<vmem>>)
      %c3_i32_98 = arith.constant 3 : i32
      %c0_i32_99 = arith.constant 0 : i32
      %147 = tpu.memref_slice %arg7[%34, %c0_i32_99] : memref<512x128xf32, #tpu.memory_space<any>> -> memref<1x128xf32, #tpu.memory_space<any>>
      %c3_i32_100 = arith.constant 3 : i32
      %c0_i32_101 = arith.constant 0 : i32
      %148 = tpu.memref_slice %arg9[%c3_i32_100, %c0_i32_101] : memref<16x128xf32, #tpu.memory_space<vmem>> -> memref<1x128xf32, #tpu.memory_space<vmem>>
      %149 = tpu.memref_slice %arg11[%c3_i32_98] : memref<16x!tpu.dma_semaphore, #tpu.memory_space<semaphore_mem>> -> memref<1x!tpu.dma_semaphore, #tpu.memory_space<semaphore_mem>>
      %150 = tpu.memref_squeeze %149 : memref<1x!tpu.dma_semaphore, #tpu.memory_space<semaphore_mem>> -> memref<!tpu.dma_semaphore, #tpu.memory_space<semaphore_mem>>
      tpu.wait_dma2 semaphore(%150 : memref<!tpu.dma_semaphore, #tpu.memory_space<semaphore_mem>>) src(%147 : memref<1x128xf32, #tpu.memory_space<any>>) dst(%148 : memref<1x128xf32, #tpu.memory_space<vmem>>)
      %c4_i32_102 = arith.constant 4 : i32
      %c0_i32_103 = arith.constant 0 : i32
      %151 = tpu.memref_slice %arg7[%42, %c0_i32_103] : memref<512x128xf32, #tpu.memory_space<any>> -> memref<1x128xf32, #tpu.memory_space<any>>
      %c4_i32_104 = arith.constant 4 : i32
      %c0_i32_105 = arith.constant 0 : i32
      %152 = tpu.memref_slice %arg9[%c4_i32_104, %c0_i32_105] : memref<16x128xf32, #tpu.memory_space<vmem>> -> memref<1x128xf32, #tpu.memory_space<vmem>>
      %153 = tpu.memref_slice %arg11[%c4_i32_102] : memref<16x!tpu.dma_semaphore, #tpu.memory_space<semaphore_mem>> -> memref<1x!tpu.dma_semaphore, #tpu.memory_space<semaphore_mem>>
      %154 = tpu.memref_squeeze %153 : memref<1x!tpu.dma_semaphore, #tpu.memory_space<semaphore_mem>> -> memref<!tpu.dma_semaphore, #tpu.memory_space<semaphore_mem>>
      tpu.wait_dma2 semaphore(%154 : memref<!tpu.dma_semaphore, #tpu.memory_space<semaphore_mem>>) src(%151 : memref<1x128xf32, #tpu.memory_space<any>>) dst(%152 : memref<1x128xf32, #tpu.memory_space<vmem>>)
      %c5_i32_106 = arith.constant 5 : i32
      %c0_i32_107 = arith.constant 0 : i32
      %155 = tpu.memref_slice %arg7[%50, %c0_i32_107] : memref<512x128xf32, #tpu.memory_space<any>> -> memref<1x128xf32, #tpu.memory_space<any>>
      %c5_i32_108 = arith.constant 5 : i32
      %c0_i32_109 = arith.constant 0 : i32
      %156 = tpu.memref_slice %arg9[%c5_i32_108, %c0_i32_109] : memref<16x128xf32, #tpu.memory_space<vmem>> -> memref<1x128xf32, #tpu.memory_space<vmem>>
      %157 = tpu.memref_slice %arg11[%c5_i32_106] : memref<16x!tpu.dma_semaphore, #tpu.memory_space<semaphore_mem>> -> memref<1x!tpu.dma_semaphore, #tpu.memory_space<semaphore_mem>>
      %158 = tpu.memref_squeeze %157 : memref<1x!tpu.dma_semaphore, #tpu.memory_space<semaphore_mem>> -> memref<!tpu.dma_semaphore, #tpu.memory_space<semaphore_mem>>
      tpu.wait_dma2 semaphore(%158 : memref<!tpu.dma_semaphore, #tpu.memory_space<semaphore_mem>>) src(%155 : memref<1x128xf32, #tpu.memory_space<any>>) dst(%156 : memref<1x128xf32, #tpu.memory_space<vmem>>)
      %c6_i32_110 = arith.constant 6 : i32
      %c0_i32_111 = arith.constant 0 : i32
      %159 = tpu.memref_slice %arg7[%58, %c0_i32_111] : memref<512x128xf32, #tpu.memory_space<any>> -> memref<1x128xf32, #tpu.memory_space<any>>
      %c6_i32_112 = arith.constant 6 : i32
      %c0_i32_113 = arith.constant 0 : i32
      %160 = tpu.memref_slice %arg9[%c6_i32_112, %c0_i32_113] : memref<16x128xf32, #tpu.memory_space<vmem>> -> memref<1x128xf32, #tpu.memory_space<vmem>>
      %161 = tpu.memref_slice %arg11[%c6_i32_110] : memref<16x!tpu.dma_semaphore, #tpu.memory_space<semaphore_mem>> -> memref<1x!tpu.dma_semaphore, #tpu.memory_space<semaphore_mem>>
      %162 = tpu.memref_squeeze %161 : memref<1x!tpu.dma_semaphore, #tpu.memory_space<semaphore_mem>> -> memref<!tpu.dma_semaphore, #tpu.memory_space<semaphore_mem>>
      tpu.wait_dma2 semaphore(%162 : memref<!tpu.dma_semaphore, #tpu.memory_space<semaphore_mem>>) src(%159 : memref<1x128xf32, #tpu.memory_space<any>>) dst(%160 : memref<1x128xf32, #tpu.memory_space<vmem>>)
      %c7_i32_114 = arith.constant 7 : i32
      %c0_i32_115 = arith.constant 0 : i32
      %163 = tpu.memref_slice %arg7[%66, %c0_i32_115] : memref<512x128xf32, #tpu.memory_space<any>> -> memref<1x128xf32, #tpu.memory_space<any>>
      %c7_i32_116 = arith.constant 7 : i32
      %c0_i32_117 = arith.constant 0 : i32
      %164 = tpu.memref_slice %arg9[%c7_i32_116, %c0_i32_117] : memref<16x128xf32, #tpu.memory_space<vmem>> -> memref<1x128xf32, #tpu.memory_space<vmem>>
      %165 = tpu.memref_slice %arg11[%c7_i32_114] : memref<16x!tpu.dma_semaphore, #tpu.memory_space<semaphore_mem>> -> memref<1x!tpu.dma_semaphore, #tpu.memory_space<semaphore_mem>>
      %166 = tpu.memref_squeeze %165 : memref<1x!tpu.dma_semaphore, #tpu.memory_space<semaphore_mem>> -> memref<!tpu.dma_semaphore, #tpu.memory_space<semaphore_mem>>
      tpu.wait_dma2 semaphore(%166 : memref<!tpu.dma_semaphore, #tpu.memory_space<semaphore_mem>>) src(%163 : memref<1x128xf32, #tpu.memory_space<any>>) dst(%164 : memref<1x128xf32, #tpu.memory_space<vmem>>)
      %c8_i32_118 = arith.constant 8 : i32
      %c0_i32_119 = arith.constant 0 : i32
      %167 = tpu.memref_slice %arg7[%74, %c0_i32_119] : memref<512x128xf32, #tpu.memory_space<any>> -> memref<1x128xf32, #tpu.memory_space<any>>
      %c8_i32_120 = arith.constant 8 : i32
      %c0_i32_121 = arith.constant 0 : i32
      %168 = tpu.memref_slice %arg9[%c8_i32_120, %c0_i32_121] : memref<16x128xf32, #tpu.memory_space<vmem>> -> memref<1x128xf32, #tpu.memory_space<vmem>>
      %169 = tpu.memref_slice %arg11[%c8_i32_118] : memref<16x!tpu.dma_semaphore, #tpu.memory_space<semaphore_mem>> -> memref<1x!tpu.dma_semaphore, #tpu.memory_space<semaphore_mem>>
      %170 = tpu.memref_squeeze %169 : memref<1x!tpu.dma_semaphore, #tpu.memory_space<semaphore_mem>> -> memref<!tpu.dma_semaphore, #tpu.memory_space<semaphore_mem>>
      tpu.wait_dma2 semaphore(%170 : memref<!tpu.dma_semaphore, #tpu.memory_space<semaphore_mem>>) src(%167 : memref<1x128xf32, #tpu.memory_space<any>>) dst(%168 : memref<1x128xf32, #tpu.memory_space<vmem>>)
      %c9_i32_122 = arith.constant 9 : i32
      %c0_i32_123 = arith.constant 0 : i32
      %171 = tpu.memref_slice %arg7[%82, %c0_i32_123] : memref<512x128xf32, #tpu.memory_space<any>> -> memref<1x128xf32, #tpu.memory_space<any>>
      %c9_i32_124 = arith.constant 9 : i32
      %c0_i32_125 = arith.constant 0 : i32
      %172 = tpu.memref_slice %arg9[%c9_i32_124, %c0_i32_125] : memref<16x128xf32, #tpu.memory_space<vmem>> -> memref<1x128xf32, #tpu.memory_space<vmem>>
      %173 = tpu.memref_slice %arg11[%c9_i32_122] : memref<16x!tpu.dma_semaphore, #tpu.memory_space<semaphore_mem>> -> memref<1x!tpu.dma_semaphore, #tpu.memory_space<semaphore_mem>>
      %174 = tpu.memref_squeeze %173 : memref<1x!tpu.dma_semaphore, #tpu.memory_space<semaphore_mem>> -> memref<!tpu.dma_semaphore, #tpu.memory_space<semaphore_mem>>
      tpu.wait_dma2 semaphore(%174 : memref<!tpu.dma_semaphore, #tpu.memory_space<semaphore_mem>>) src(%171 : memref<1x128xf32, #tpu.memory_space<any>>) dst(%172 : memref<1x128xf32, #tpu.memory_space<vmem>>)
      %c10_i32_126 = arith.constant 10 : i32
      %c0_i32_127 = arith.constant 0 : i32
      %175 = tpu.memref_slice %arg7[%90, %c0_i32_127] : memref<512x128xf32, #tpu.memory_space<any>> -> memref<1x128xf32, #tpu.memory_space<any>>
      %c10_i32_128 = arith.constant 10 : i32
      %c0_i32_129 = arith.constant 0 : i32
      %176 = tpu.memref_slice %arg9[%c10_i32_128, %c0_i32_129] : memref<16x128xf32, #tpu.memory_space<vmem>> -> memref<1x128xf32, #tpu.memory_space<vmem>>
      %177 = tpu.memref_slice %arg11[%c10_i32_126] : memref<16x!tpu.dma_semaphore, #tpu.memory_space<semaphore_mem>> -> memref<1x!tpu.dma_semaphore, #tpu.memory_space<semaphore_mem>>
      %178 = tpu.memref_squeeze %177 : memref<1x!tpu.dma_semaphore, #tpu.memory_space<semaphore_mem>> -> memref<!tpu.dma_semaphore, #tpu.memory_space<semaphore_mem>>
      tpu.wait_dma2 semaphore(%178 : memref<!tpu.dma_semaphore, #tpu.memory_space<semaphore_mem>>) src(%175 : memref<1x128xf32, #tpu.memory_space<any>>) dst(%176 : memref<1x128xf32, #tpu.memory_space<vmem>>)
      %c11_i32_130 = arith.constant 11 : i32
      %c0_i32_131 = arith.constant 0 : i32
      %179 = tpu.memref_slice %arg7[%98, %c0_i32_131] : memref<512x128xf32, #tpu.memory_space<any>> -> memref<1x128xf32, #tpu.memory_space<any>>
      %c11_i32_132 = arith.constant 11 : i32
      %c0_i32_133 = arith.constant 0 : i32
      %180 = tpu.memref_slice %arg9[%c11_i32_132, %c0_i32_133] : memref<16x128xf32, #tpu.memory_space<vmem>> -> memref<1x128xf32, #tpu.memory_space<vmem>>
      %181 = tpu.memref_slice %arg11[%c11_i32_130] : memref<16x!tpu.dma_semaphore, #tpu.memory_space<semaphore_mem>> -> memref<1x!tpu.dma_semaphore, #tpu.memory_space<semaphore_mem>>
      %182 = tpu.memref_squeeze %181 : memref<1x!tpu.dma_semaphore, #tpu.memory_space<semaphore_mem>> -> memref<!tpu.dma_semaphore, #tpu.memory_space<semaphore_mem>>
      tpu.wait_dma2 semaphore(%182 : memref<!tpu.dma_semaphore, #tpu.memory_space<semaphore_mem>>) src(%179 : memref<1x128xf32, #tpu.memory_space<any>>) dst(%180 : memref<1x128xf32, #tpu.memory_space<vmem>>)
      %c12_i32_134 = arith.constant 12 : i32
      %c0_i32_135 = arith.constant 0 : i32
      %183 = tpu.memref_slice %arg7[%106, %c0_i32_135] : memref<512x128xf32, #tpu.memory_space<any>> -> memref<1x128xf32, #tpu.memory_space<any>>
      %c12_i32_136 = arith.constant 12 : i32
      %c0_i32_137 = arith.constant 0 : i32
      %184 = tpu.memref_slice %arg9[%c12_i32_136, %c0_i32_137] : memref<16x128xf32, #tpu.memory_space<vmem>> -> memref<1x128xf32, #tpu.memory_space<vmem>>
      %185 = tpu.memref_slice %arg11[%c12_i32_134] : memref<16x!tpu.dma_semaphore, #tpu.memory_space<semaphore_mem>> -> memref<1x!tpu.dma_semaphore, #tpu.memory_space<semaphore_mem>>
      %186 = tpu.memref_squeeze %185 : memref<1x!tpu.dma_semaphore, #tpu.memory_space<semaphore_mem>> -> memref<!tpu.dma_semaphore, #tpu.memory_space<semaphore_mem>>
      tpu.wait_dma2 semaphore(%186 : memref<!tpu.dma_semaphore, #tpu.memory_space<semaphore_mem>>) src(%183 : memref<1x128xf32, #tpu.memory_space<any>>) dst(%184 : memref<1x128xf32, #tpu.memory_space<vmem>>)
      %c13_i32_138 = arith.constant 13 : i32
      %c0_i32_139 = arith.constant 0 : i32
      %187 = tpu.memref_slice %arg7[%114, %c0_i32_139] : memref<512x128xf32, #tpu.memory_space<any>> -> memref<1x128xf32, #tpu.memory_space<any>>
      %c13_i32_140 = arith.constant 13 : i32
      %c0_i32_141 = arith.constant 0 : i32
      %188 = tpu.memref_slice %arg9[%c13_i32_140, %c0_i32_141] : memref<16x128xf32, #tpu.memory_space<vmem>> -> memref<1x128xf32, #tpu.memory_space<vmem>>
      %189 = tpu.memref_slice %arg11[%c13_i32_138] : memref<16x!tpu.dma_semaphore, #tpu.memory_space<semaphore_mem>> -> memref<1x!tpu.dma_semaphore, #tpu.memory_space<semaphore_mem>>
      %190 = tpu.memref_squeeze %189 : memref<1x!tpu.dma_semaphore, #tpu.memory_space<semaphore_mem>> -> memref<!tpu.dma_semaphore, #tpu.memory_space<semaphore_mem>>
      tpu.wait_dma2 semaphore(%190 : memref<!tpu.dma_semaphore, #tpu.memory_space<semaphore_mem>>) src(%187 : memref<1x128xf32, #tpu.memory_space<any>>) dst(%188 : memref<1x128xf32, #tpu.memory_space<vmem>>)
      %c14_i32_142 = arith.constant 14 : i32
      %c0_i32_143 = arith.constant 0 : i32
      %191 = tpu.memref_slice %arg7[%122, %c0_i32_143] : memref<512x128xf32, #tpu.memory_space<any>> -> memref<1x128xf32, #tpu.memory_space<any>>
      %c14_i32_144 = arith.constant 14 : i32
      %c0_i32_145 = arith.constant 0 : i32
      %192 = tpu.memref_slice %arg9[%c14_i32_144, %c0_i32_145] : memref<16x128xf32, #tpu.memory_space<vmem>> -> memref<1x128xf32, #tpu.memory_space<vmem>>
      %193 = tpu.memref_slice %arg11[%c14_i32_142] : memref<16x!tpu.dma_semaphore, #tpu.memory_space<semaphore_mem>> -> memref<1x!tpu.dma_semaphore, #tpu.memory_space<semaphore_mem>>
      %194 = tpu.memref_squeeze %193 : memref<1x!tpu.dma_semaphore, #tpu.memory_space<semaphore_mem>> -> memref<!tpu.dma_semaphore, #tpu.memory_space<semaphore_mem>>
      tpu.wait_dma2 semaphore(%194 : memref<!tpu.dma_semaphore, #tpu.memory_space<semaphore_mem>>) src(%191 : memref<1x128xf32, #tpu.memory_space<any>>) dst(%192 : memref<1x128xf32, #tpu.memory_space<vmem>>)
      %c15_i32_146 = arith.constant 15 : i32
      %c0_i32_147 = arith.constant 0 : i32
      %195 = tpu.memref_slice %arg7[%130, %c0_i32_147] : memref<512x128xf32, #tpu.memory_space<any>> -> memref<1x128xf32, #tpu.memory_space<any>>
      %c15_i32_148 = arith.constant 15 : i32
      %c0_i32_149 = arith.constant 0 : i32
      %196 = tpu.memref_slice %arg9[%c15_i32_148, %c0_i32_149] : memref<16x128xf32, #tpu.memory_space<vmem>> -> memref<1x128xf32, #tpu.memory_space<vmem>>
      %197 = tpu.memref_slice %arg11[%c15_i32_146] : memref<16x!tpu.dma_semaphore, #tpu.memory_space<semaphore_mem>> -> memref<1x!tpu.dma_semaphore, #tpu.memory_space<semaphore_mem>>
      %198 = tpu.memref_squeeze %197 : memref<1x!tpu.dma_semaphore, #tpu.memory_space<semaphore_mem>> -> memref<!tpu.dma_semaphore, #tpu.memory_space<semaphore_mem>>
      tpu.wait_dma2 semaphore(%198 : memref<!tpu.dma_semaphore, #tpu.memory_space<semaphore_mem>>) src(%195 : memref<1x128xf32, #tpu.memory_space<any>>) dst(%196 : memref<1x128xf32, #tpu.memory_space<vmem>>)
      %c0_150 = arith.constant 0 : index
      %c0_151 = arith.constant 0 : index
      %199 = vector.load %arg9[%c0_150, %c0_151] : memref<16x128xf32, #tpu.memory_space<vmem>>, vector<16x128xf32>
      %c0_152 = arith.constant 0 : index
      %c0_153 = arith.constant 0 : index
      %200 = vector.load %arg3[%c0_152, %c0_153] : memref<16x128xf32, #tpu.memory_space<vmem>>, vector<16x128xf32>
      %201 = arith.addf %199, %200 : vector<16x128xf32>
      %cst_154 = arith.constant dense<0.000000e+00> : vector<16xf32>
      %202 = vector.multi_reduction <add>, %201, %cst_154 [1] : vector<16x128xf32> to vector<16xf32>
      %203 = vector.shape_cast %202 : vector<16xf32> to vector<16x1xf32>
      %cst_155 = arith.constant 1.280000e+02 : f32
      %204 = vector.broadcast %cst_155 : f32 to vector<16x1xf32>
      %205 = arith.divf %203, %204 : vector<16x1xf32>
      %206 = vector.broadcast %205 : vector<16x1xf32> to vector<16x128xf32>
      %207 = arith.subf %201, %206 : vector<16x128xf32>
      %208 = arith.mulf %207, %207 : vector<16x128xf32>
      %cst_156 = arith.constant dense<0.000000e+00> : vector<16xf32>
      %209 = vector.multi_reduction <add>, %208, %cst_156 [1] : vector<16x128xf32> to vector<16xf32>
      %210 = vector.shape_cast %209 : vector<16xf32> to vector<16x1xf32>
      %cst_157 = arith.constant 1.280000e+02 : f32
      %211 = vector.broadcast %cst_157 : f32 to vector<16x1xf32>
      %212 = arith.divf %210, %211 : vector<16x1xf32>
      %cst_158 = arith.constant 9.99999974E-6 : f32
      %213 = vector.broadcast %cst_158 : f32 to vector<16x1xf32>
      %214 = arith.addf %212, %213 : vector<16x1xf32>
      %215 = math.rsqrt %214 : vector<16x1xf32>
      %216 = vector.broadcast %215 : vector<16x1xf32> to vector<16x128xf32>
      %217 = arith.mulf %207, %216 : vector<16x128xf32>
      %c0_159 = arith.constant 0 : index
      %c0_160 = arith.constant 0 : index
      %218 = vector.load %arg4[%c0_159, %c0_160] : memref<1x128xf32, #tpu.memory_space<vmem>>, vector<1x128xf32>
      %219 = vector.broadcast %218 : vector<1x128xf32> to vector<16x128xf32>
      %220 = arith.mulf %217, %219 : vector<16x128xf32>
      %c0_161 = arith.constant 0 : index
      %c0_162 = arith.constant 0 : index
      %221 = vector.load %arg5[%c0_161, %c0_162] : memref<1x128xf32, #tpu.memory_space<vmem>>, vector<1x128xf32>
      %222 = vector.broadcast %221 : vector<1x128xf32> to vector<16x128xf32>
      %223 = arith.addf %220, %222 : vector<16x128xf32>
      %224 = arith.truncf %223 : vector<16x128xf32> to vector<16x128xbf16>
      %c0_163 = arith.constant 0 : index
      %c0_164 = arith.constant 0 : index
      %225 = vector.load %arg10[%c0_163, %c0_164] : memref<16x128xbf16, #tpu.memory_space<vmem>>, vector<16x128xbf16>
      tpu.vector_store %arg10[%c0_163, %c0_164], %224 {strides = array<i32>} : memref<16x128xbf16, #tpu.memory_space<vmem>>, vector<16x128xbf16>,
    } else {
    }
    %c0 = arith.constant 0 : index
    %c0_1 = arith.constant 0 : index
    %3 = vector.load %arg10[%c0, %c0_1] : memref<16x128xbf16, #tpu.memory_space<vmem>>, vector<16x128xbf16>
    %c0_2 = arith.constant 0 : index
    %c0_3 = arith.constant 0 : index
    %4 = vector.load %arg6[%c0_2, %c0_3] : memref<128x256xbf16, #tpu.memory_space<vmem>>, vector<128x256xbf16>
    %cst = arith.constant dense<0.000000e+00> : vector<16x256xf32>
    %5 = tpu.matmul %3, %4, %cst {dimension_numbers = #tpu.dot_dimension_numbers<[1], [0], [0], [1], [0, 0, 1, 1], [], []>} : vector<16x128xbf16>, vector<128x256xbf16>, vector<16x256xf32> -> vector<16x256xf32>
    %c0_4 = arith.constant 0 : index
    %c0_5 = arith.constant 0 : index
    %6 = vector.load %arg8[%c0_4, %c0_5] : memref<16x256xf32, #tpu.memory_space<vmem>>, vector<16x256xf32>
    tpu.vector_store %arg8[%c0_4, %c0_5], %5 {strides = array<i32>} : memref<16x256xf32, #tpu.memory_space<vmem>>, vector<16x256xf32>,
    return
  }
  func.func @transform_0(%arg0: i32, %arg1: i32, %arg2: memref<32xi32, #tpu.memory_space<smem>>) -> (i32, i32) {
    %c1_i32 = arith.constant 1 : i32
    %c0_i32 = arith.constant 0 : i32
    %0 = arith.cmpi eq, %c1_i32, %c0_i32 : i32
    %c1_i32_0 = arith.constant 1 : i32
    %1 = arith.select %0, %c1_i32_0, %c1_i32 : i32
    %2 = arith.remsi %arg0, %1 : i32
    %c0_i32_1 = arith.constant 0 : i32
    %3 = arith.cmpi ne, %2, %c0_i32_1 : i32
    %c0_i32_2 = arith.constant 0 : i32
    %4 = arith.cmpi slt, %2, %c0_i32_2 : i32
    %c0_i32_3 = arith.constant 0 : i32
    %5 = arith.cmpi slt, %1, %c0_i32_3 : i32
    %6 = arith.xori %4, %5 : i1
    %7 = arith.andi %6, %3 : i1
    %8 = arith.addi %2, %1 : i32
    %9 = arith.select %7, %8, %2 : i32
    %c0_i32_4 = arith.constant 0 : i32
    %c0_i32_5 = arith.constant 0 : i32
    return %9, %c0_i32_4 : i32, i32
  }
  func.func @transform_1(%arg0: i32, %arg1: i32, %arg2: memref<32xi32, #tpu.memory_space<smem>>) -> (i32, i32) {
    %c0_i32 = arith.constant 0 : i32
    %c0_i32_0 = arith.constant 0 : i32
    %c0_i32_1 = arith.constant 0 : i32
    return %c0_i32, %c0_i32_0 : i32, i32
  }
  func.func @transform_2(%arg0: i32, %arg1: i32, %arg2: memref<32xi32, #tpu.memory_space<smem>>) -> (i32, i32) {
    %c0_i32 = arith.constant 0 : i32
    %c0_i32_0 = arith.constant 0 : i32
    %c0_i32_1 = arith.constant 0 : i32
    return %c0_i32, %c0_i32_0 : i32, i32
  }
  func.func @transform_3(%arg0: i32, %arg1: i32, %arg2: memref<32xi32, #tpu.memory_space<smem>>) -> (i32, i32) {
    %c0_i32 = arith.constant 0 : i32
    %c0_i32_0 = arith.constant 0 : i32
    return %c0_i32, %arg1 : i32, i32
  }
  func.func @transform_5(%arg0: i32, %arg1: i32, %arg2: memref<32xi32, #tpu.memory_space<smem>>) -> (i32, i32) {
    %c0_i32 = arith.constant 0 : i32
    return %arg0, %arg1 : i32, i32
  }
}

</mosaic_0001>

<bundles_post_ra>
// kernel: hf_base_model_forward.1
= control target key start
LH: loop header
LB: loop body
LE: loop exit
PB: predicated region body
PF: predicated region fallthrough
CT: control target
= control target key end

     0   :  { %s2403_s0 = inlined_call_operand.vmem [shape: s32[32], index: 0, kind: input, shape index: {}]   ;;  %s2404_s1 = inlined_call_operand.vmem [shape: f32[16,128], index: 1, kind: input, shape index: {}]   ;;  %s2405_s2 = inlined_call_operand.vmem [shape: f32[1,128], index: 2, kind: input, shape index: {}]   ;;  %s2406_s3 = inlined_call_operand.vmem [shape: f32[1,128], index: 3, kind: input, shape index: {}]   ;;  %s2407_s4 = inlined_call_operand.vmem [shape: bf16[128,512], index: 4, kind: input, shape index: {}]   ;;  %s2408_s5 = inlined_call_operand.vmem [shape: f32[512,128], index: 5, kind: input, shape index: {}]   ;;  %s2409_s6 = inlined_call_operand.hbm [shape: f32[32,512], index: 6, kind: output, shape index: {}]  }
   0x1   :  { %2415 = sst [smem:[#allocation49_spill]] %s2407_s4  ;;  %s11_s23 = sshll.u32 %s2403_s0, 4  ;;  %s12_s23 = int_to_ptr.vmem [resolvable:$true] %s11_s23 }
   0x2   :  { %s1905_s24 = scalar_lea.vmem %s12_s23, 16  ;;  %p1910_p1 = scmp.lt.s32.totalorder %s12_s23, %s12_s23 }
   0x3   :  { %p1906_p0 = scmp.ne.s32.totalorder %s12_s23, %s1905_s24  ;;  %p1911_p2 = scmp.lt.s32.totalorder %s1905_s24, %s1905_s24 }
   0x5   :  { %p1912_p3 = por %p1911_p2, %p1910_p1 }
   0x7   :  { %p1913_p4 = pnand %p1912_p3, %p1906_p0 }
   0x9   :  { %1916 = shalt.err (!%p1913_p4)  }
   0xa   :  { %s2063_s25 = smov [#allocation6]  }
   0xb   :  { %14 = dma.vmem_to_smem %s12_s23, 16, %s2063_s25, [#allocation5] }
   0xc   :  { %1985 = dma.done.wait [#allocation5], 16 }
   0xd   :  { %1986 = vsyncadd [#allocation5], 4294967280 }
   0xe   :  { %16 = sfence }
   0xf   :  { %17 = vsyncpa [#allocation9], 0 }
  0x10   :  { %19 = vsyncpa [#allocation9 + $0x1], 0  ;;  %s2107_s26 = smov 0   ;;  %s2109_s27 = smov 0  }
  0x11   :  { %s2111_s0 = smov 0   ;;  %s2113_s28 = smov 0  }
  0x12   :  { %s2115_s29 = smov 0   ;;  %s2117_s30 = smov 0  }
  0x13   :  { %s2119_s7 = smov 0   ;;  %s2121_s8 = smov 0  }
  0x14   :  { %s2123_s9 = smov 0   ;;  %s2125_s10 = smov 0  }
  0x15 LB: > { %2416 = sst [smem:[#allocation44_spill]] %s2053_s8  ;;  %s1730_s11 = sadd.s32 4294967295, %s2061_s10   ;;  %s2061_s10 = sphi %s2125_s10, %s25_s10   ;;  %s2057_s9 = sphi %s2123_s9, %s2430_s9   ;;  %s2053_s8 = sphi %s2121_s8, %s2429_s8   ;;  %s2049_s7 = sphi %s2119_s7, %s2428_s7   ;;  %s2045_s30 = sphi %s2117_s30, %s2427_s30   ;;  %s2041_s29 = sphi %s2115_s29, %s2435_s29   ;;  %s2037_s28 = sphi %s2113_s28, %s2434_s28   ;;  %s2033_s0 = sphi %s2111_s0, %s2433_s0   ;;  %s2029_s27 = sphi %s2109_s27, %s2432_s27   ;;  %s2025_s26 = sphi %s2107_s26, %s2431_s26  }
  0x16   : > { %2417 = sst [smem:[#allocation45_spill]] %s2057_s9  ;;  %s1731_s12 = sadd.s32 4294967294, %s2061_s10  }
  0x17   : > { %s34_s13 = sadd.s32 1, %s2053_s8  ;;  %s37_s14 = sadd.s32 1, %s2057_s9 }
  0x18   : > { %p35_p5 = scmp.ge.s32.totalorder %s34_s13, 2  ;;  %s107_s15 = sadd.s32 1, %s2041_s29 }
  0x19   : > { %p114_p6 = scmp.ne.s32.totalorder %s2041_s29, %s2037_s28  ;;  %p115_p7 = scmp.eq.s32.totalorder %s2061_s10, 0 }
  0x1a   : > { %s2437_s13 = smov (%p35_p5, %s34_s13), 0  ;;  %s2439_s14 = smov (!%p35_p5, %s37_s14), %s2057_s9 }
  0x1b   : > { %2418 = sst [smem:[#allocation46_spill]] %s2437_s13  ;;  %s104_s16 = ssub.s32 %s2053_s8, %s2437_s13 }
  0x1c   : > { %p2170_p8 = por %p115_p7, %p114_p6  ;;  %p39_p9 = scmp.ge.s32.totalorder %s2439_s14, 2 }
  0x1d   : > { %p105_p10 = scmp.eq.s32.totalorder %s104_s16, 0  ;;  %s135_s18 = sadd.s32 1, %s2033_s0 }
  0x1e   : > { %p145_p11 = scmp.ne.s32.totalorder %s2033_s0, %s2029_s27  ;;  %s2441_s14 = smov (%p39_p9, %s2439_s14), 0 }
  0x1f   : > { %2420 = sst [smem:[#allocation47_spill]] %s2441_s14  ;;  %s130_s20 = ssub.s32 %s2057_s9, %s2441_s14 }
  0x20   : > { %s2180_s19 = scalar_select %p105_p10, %s2041_s29, %s107_s15  }
  0x21   : > { %p146_p12 = scmp.eq.s32.totalorder %s1730_s11, 3  ;;  %s132_s21 = sor.u32 %s130_s20, %s104_s16 }
  0x22   : > { %2421 = sst [smem:[#allocation48_spill]] %s2180_s19  ;;  %p151_p13 = scmp.ne.s32.totalorder %s2029_s27, %s2025_s26 }
  0x23   : > { %p133_p0 = scmp.eq.s32.totalorder %s132_s21, 0  ;;  %p2186_p1 = por %p146_p12, %p145_p11 }
  0x24   : > { %p152_p2 = scmp.eq.s32.totalorder %s1731_s12, 3  ;;  %p1733_p4 = scmp.ge.s32.totalorder %s2061_s10, 4 }
  0x25   : > { %s2191_s23 = scalar_select %p133_p0, %s2033_s0, %s135_s18  }
  0x26   : > { %p2193_p3 = por %p152_p2, %p151_p13  ;;  %177 = sbr.rel (%p1733_p4) target bundleno = 63 (0x3f), region = 28 }
  0x2d   : > { %180 = sbr.rel (!%p2170_p8) target bundleno = 63 (0x3f), region = 32  ;;  %s182_s25 = sand.u32 (%p2170_p8), 1, %s2041_s29  }
  0x2e   : > { %s1783_s11 = sshll.u32 (%p2170_p8), %s2053_s8, 3  ;;  %s1734_s15 = sshll.u32 (%p2170_p8), %s182_s25, 7 }
  0x2f   : > { %s2424_s4 = sld [smem:[#allocation49_spill]] (%p2170_p8)  ;;  %s184_s17 = scalar_lea.vmem (%p2170_p8), [#allocation7], %s1734_s15 }
  0x35   : > { %s2205_s12 = scalar_lea.vmem %s2424_s4, %s1783_s11 }
  0x36   : > { %v245_v0 = vld [vmem:[%s2205_s12] sm:$0xff]  ;;  %v247_v1 = vld [vmem:[%s2205_s12 + $0x10] sm:$0xff] }
  0x37   : > { %v249_v2 = vld [vmem:[%s2205_s12 + $0x20] sm:$0xff]  ;;  %246 = vst [vmem:[%s184_s17] sm:$0xff] %v245_v0  ;;  %248 = vst [vmem:[%s184_s17 + $0x8] sm:$0xff] %v247_v1  ;;  %v251_v3 = vld [vmem:[%s2205_s12 + $0x30] sm:$0xff] }
  0x38   : > { %250 = vst [vmem:[%s184_s17 + $0x10] sm:$0xff] %v249_v2  ;;  %v253_v4 = vld [vmem:[%s2205_s12 + $0x40] sm:$0xff]  ;;  %v255_v5 = vld [vmem:[%s2205_s12 + $0x50] sm:$0xff]  ;;  %252 = vst [vmem:[%s184_s17 + $0x18] sm:$0xff] %v251_v3 }
  0x39   : > { %254 = vst [vmem:[%s184_s17 + $0x20] sm:$0xff] %v253_v4  ;;  %256 = vst [vmem:[%s184_s17 + $0x28] sm:$0xff] %v255_v5  ;;  %v257_v6 = vld [vmem:[%s2205_s12 + $0x60] sm:$0xff]  ;;  %v259_v7 = vld [vmem:[%s2205_s12 + $0x70] sm:$0xff] }
  0x3a   : > { %v261_v8 = vld [vmem:[%s2205_s12 + $0x80] sm:$0xff]  ;;  %258 = vst [vmem:[%s184_s17 + $0x30] sm:$0xff] %v257_v6  ;;  %260 = vst [vmem:[%s184_s17 + $0x38] sm:$0xff] %v259_v7  ;;  %v263_v9 = vld [vmem:[%s2205_s12 + $0x90] sm:$0xff] }
  0x3b   : > { %262 = vst [vmem:[%s184_s17 + $0x40] sm:$0xff] %v261_v8  ;;  %v265_v10 = vld [vmem:[%s2205_s12 + $0xa0] sm:$0xff]  ;;  %v267_v11 = vld [vmem:[%s2205_s12 + $0xb0] sm:$0xff]  ;;  %264 = vst [vmem:[%s184_s17 + $0x48] sm:$0xff] %v263_v9 }
  0x3c   : > { %266 = vst [vmem:[%s184_s17 + $0x50] sm:$0xff] %v265_v10  ;;  %268 = vst [vmem:[%s184_s17 + $0x58] sm:$0xff] %v267_v11  ;;  %v269_v12 = vld [vmem:[%s2205_s12 + $0xc0] sm:$0xff]  ;;  %v271_v13 = vld [vmem:[%s2205_s12 + $0xd0] sm:$0xff] }
  0x3d   : > { %v273_v14 = vld [vmem:[%s2205_s12 + $0xe0] sm:$0xff]  ;;  %270 = vst [vmem:[%s184_s17 + $0x60] sm:$0xff] %v269_v12  ;;  %272 = vst [vmem:[%s184_s17 + $0x68] sm:$0xff] %v271_v13  ;;  %v275_v15 = vld [vmem:[%s2205_s12 + $0xf0] sm:$0xff] }
  0x3e   : > { %274 = vst [vmem:[%s184_s17 + $0x70] sm:$0xff] %v273_v14  ;;  %276 = vst [vmem:[%s184_s17 + $0x78] sm:$0xff] %v275_v15 }
  0x3f PF: > { %p1737_p5 = scmp.ge.s32.totalorder %s2061_s10, 1  ;;  %p281_p6 = scmp.lt.s32.totalorder %s2061_s10, 5 }
  0x41   : > { %p282_p7 = pnand %p1737_p5, %p281_p6 }
  0x42   : > { %s288_s18 = sand.u32 (!%p282_p7), 1, %s2037_s28   ;;  %s2410_s21 = sand.u32 (!%p282_p7), 1, %s2029_s27  }
  0x43   : > { %285 = sbr.rel (%p282_p7) target bundleno = 852 (0x354), region = 70  ;;  %s1738_s25 = sshll.u32 (!%p282_p7), %s288_s18, 7 }
  0x44   : > { %s1739_s11 = sshll.u32 (!%p282_p7), %s2410_s21, 5  ;;  %s2229_s15 = scalar_lea.vmem (!%p282_p7), [#allocation7], %s1738_s25 }
  0x45   : > { %s2231_s16 = scalar_lea.vmem (!%p282_p7), [#allocation8], %s1739_s11  ;;  %p1740_p8 = scmp.ne.s32.totalorder (!%p282_p7), %s2045_s30, 0 }
  0x4a   : > { %320 = sbr.rel (%p1740_p8) target bundleno = 588 (0x24c), region = 78  ;;  %s2235_s20 = sshll.u32 (!%p1740_p8), %s2049_s7, 4 }
  0x4b   : > { %s322_s12 = sld [smem:[#allocation6 + %s2235_s20]] (!%p1740_p8) }
  0x51   : > { %s323_s28 = scalar_lea.vmem %s2408_s5, %s322_s12 }
  0x52   : > { %v341_v16 = vld [vmem:[%s323_s28] sm:$0x1] }
  0x53   : > { %342 = vst [vmem:[#allocation2] sm:$0x1] %v341_v16 }
  0x54   : > { %367 = vsyncadd [#allocation4], 16  ;;  %s368_s18 = sadd.s32 1, %s2235_s20 }
  0x55   : > { %s369_s25 = sld [smem:[#allocation6 + %s368_s18]] }
  0x5b   : > { %s370_s14 = scalar_lea.vmem %s2408_s5, %s369_s25 }
  0x5c   : > { %v390_v17 = vld [vmem:[%s370_s14] sm:$0x1] }
  0x5d   : > { %391 = vst [vmem:[#allocation2 + $0x1] sm:$0x1] %v390_v17 }
  0x5e   : > { %416 = vsyncadd [#allocation4 + $0x1], 16  ;;  %s417_s13 = sadd.s32 2, %s2235_s20 }
  0x5f   : > { %s418_s9 = sld [smem:[#allocation6 + %s417_s13]] }
  0x65   : > { %s419_s4 = scalar_lea.vmem %s2408_s5, %s418_s9 }
  0x66   : > { %v439_v18 = vld [vmem:[%s419_s4] sm:$0x1] }
  0x67   : > { %440 = vst [vmem:[#allocation2 + $0x2] sm:$0x1] %v439_v18 }
  0x68   : > { %465 = vsyncadd [#allocation4 + $0x2], 16  ;;  %s466_s12 = sadd.s32 3, %s2235_s20 }
  0x69   : > { %s467_s17 = sld [smem:[#allocation6 + %s466_s12]] }
  0x6f   : > { %s468_s21 = scalar_lea.vmem %s2408_s5, %s467_s17 }
  0x70   : > { %v488_v19 = vld [vmem:[%s468_s21] sm:$0x1] }
  0x71   : > { %489 = vst [vmem:[#allocation2 + $0x3] sm:$0x1] %v488_v19 }
  0x72   : > { %514 = vsyncadd [#allocation4 + $0x3], 16  ;;  %s515_s14 = sadd.s32 4, %s2235_s20 }
  0x73   : > { %s516_s13 = sld [smem:[#allocation6 + %s515_s14]] }
  0x79   : > { %s517_s8 = scalar_lea.vmem %s2408_s5, %s516_s13 }
  0x7a   : > { %v537_v20 = vld [vmem:[%s517_s8] sm:$0x1] }
  0x7b   : > { %538 = vst [vmem:[#allocation2 + $0x4] sm:$0x1] %v537_v20 }
  0x7c   : > { %563 = vsyncadd [#allocation4 + $0x4], 16  ;;  %s564_s9 = sadd.s32 5, %s2235_s20 }
  0x7d   : > { %s565_s19 = sld [smem:[#allocation6 + %s564_s9]] }
  0x83   : > { %s566_s17 = scalar_lea.vmem %s2408_s5, %s565_s19 }
  0x84   : > { %v586_v21 = vld [vmem:[%s566_s17] sm:$0x1] }
  0x85   : > { %587 = vst [vmem:[#allocation2 + $0x5] sm:$0x1] %v586_v21 }
  0x86   : > { %612 = vsyncadd [#allocation4 + $0x5], 16  ;;  %s613_s28 = sadd.s32 6, %s2235_s20 }
  0x87   : > { %s614_s18 = sld [smem:[#allocation6 + %s613_s28]] }
  0x8d   : > { %s615_s13 = scalar_lea.vmem %s2408_s5, %s614_s18 }
  0x8e   : > { %v635_v22 = vld [vmem:[%s615_s13] sm:$0x1] }
  0x8f   : > { %636 = vst [vmem:[#allocation2 + $0x6] sm:$0x1] %v635_v22 }
  0x90   : > { %661 = vsyncadd [#allocation4 + $0x6], 16  ;;  %s662_s25 = sadd.s32 7, %s2235_s20 }
  0x91   : > { %s663_s11 = sld [smem:[#allocation6 + %s662_s25]] }
  0x97   : > { %s664_s19 = scalar_lea.vmem %s2408_s5, %s663_s11 }
  0x98   : > { %v684_v23 = vld [vmem:[%s664_s19] sm:$0x1] }
  0x99   : > { %685 = vst [vmem:[#allocation2 + $0x7] sm:$0x1] %v684_v23 }
  0x9a   : > { %710 = vsyncadd [#allocation4 + $0x7], 16  ;;  %s711_s4 = sadd.s32 8, %s2235_s20 }
  0x9b   : > { %s712_s12 = sld [smem:[#allocation6 + %s711_s4]] }
  0xa1   : > { %s713_s18 = scalar_lea.vmem %s2408_s5, %s712_s12 }
  0xa2   : > { %v733_v24 = vld [vmem:[%s713_s18] sm:$0x1] }
  0xa3   : > { %734 = vst [vmem:[#allocation2 + $0x8] sm:$0x1] %v733_v24 }
  0xa4   : > { %759 = vsyncadd [#allocation4 + $0x8], 16  ;;  %s760_s21 = sadd.s32 9, %s2235_s20 }
  0xa5   : > { %s761_s14 = sld [smem:[#allocation6 + %s760_s21]] }
  0xab   : > { %s762_s11 = scalar_lea.vmem %s2408_s5, %s761_s14 }
  0xac   : > { %v782_v25 = vld [vmem:[%s762_s11] sm:$0x1] }
  0xad   : > { %783 = vst [vmem:[#allocation2 + $0x9] sm:$0x1] %v782_v25 }
  0xae   : > { %808 = vsyncadd [#allocation4 + $0x9], 16  ;;  %s809_s8 = sadd.s32 10, %s2235_s20 }
  0xaf   : > { %s810_s9 = sld [smem:[#allocation6 + %s809_s8]] }
  0xb5   : > { %s811_s12 = scalar_lea.vmem %s2408_s5, %s810_s9 }
  0xb6   : > { %v831_v26 = vld [vmem:[%s811_s12] sm:$0x1] }
  0xb7   : > { %832 = vst [vmem:[#allocation2 + $0xa] sm:$0x1] %v831_v26 }
  0xb8   : > { %857 = vsyncadd [#allocation4 + $0xa], 16  ;;  %s858_s17 = sadd.s32 11, %s2235_s20 }
  0xb9   : > { %s859_s28 = sld [smem:[#allocation6 + %s858_s17]] }
  0xbf   : > { %s860_s14 = scalar_lea.vmem %s2408_s5, %s859_s28 }
  0xc0   : > { %v880_v27 = vld [vmem:[%s860_s14] sm:$0x1] }
  0xc1   : > { %881 = vst [vmem:[#allocation2 + $0xb] sm:$0x1] %v880_v27 }
  0xc2   : > { %906 = vsyncadd [#allocation4 + $0xb], 16  ;;  %s907_s13 = sadd.s32 12, %s2235_s20 }
  0xc3   : > { %s908_s25 = sld [smem:[#allocation6 + %s907_s13]] }
  0xc9   : > { %s909_s9 = scalar_lea.vmem %s2408_s5, %s908_s25 }
  0xca   : > { %v929_v28 = vld [vmem:[%s909_s9] sm:$0x1] }
  0xcb   : > { %930 = vst [vmem:[#allocation2 + $0xc] sm:$0x1] %v929_v28 }
  0xcc   : > { %955 = vsyncadd [#allocation4 + $0xc], 16  ;;  %s956_s19 = sadd.s32 13, %s2235_s20 }
  0xcd   : > { %s957_s4 = sld [smem:[#allocation6 + %s956_s19]] }
  0xd3   : > { %s958_s28 = scalar_lea.vmem %s2408_s5, %s957_s4 }
  0xd4   : > { %v978_v29 = vld [vmem:[%s958_s28] sm:$0x1] }
  0xd5   : > { %979 = vst [vmem:[#allocation2 + $0xd] sm:$0x1] %v978_v29 }
  0xd6   : > { %1004 = vsyncadd [#allocation4 + $0xd], 16  ;;  %s1005_s18 = sadd.s32 14, %s2235_s20 }
  0xd7   : > { %s1006_s21 = sld [smem:[#allocation6 + %s1005_s18]] }
  0xdd   : > { %s1007_s25 = scalar_lea.vmem %s2408_s5, %s1006_s21 }
  0xde   : > { %v1027_v30 = vld [vmem:[%s1007_s25] sm:$0x1] }
  0xdf   : > { %1028 = vst [vmem:[#allocation2 + $0xe] sm:$0x1] %v1027_v30 }
  0xe0   : > { %1053 = vsyncadd [#allocation4 + $0xe], 16  ;;  %s1054_s11 = sadd.s32 15, %s2235_s20 }
  0xe1   : > { %s1055_s8 = sld [smem:[#allocation6 + %s1054_s11]] }
  0xe7   : > { %s1056_s4 = scalar_lea.vmem %s2408_s5, %s1055_s8 }
  0xe8   : > { %v1076_v31 = vld [vmem:[%s1056_s4] sm:$0x1] }
  0xe9   : > { %1077 = vst [vmem:[#allocation2 + $0xf] sm:$0x1] %v1076_v31 }
  0xea   : > { %1102 = vsyncadd [#allocation4 + $0xf], 16 }
  0xeb   : > { %1987 = dma.done.wait [#allocation4], 16 }
  0xec   : > { %1988 = vsyncadd [#allocation4], 4294967280 }
  0xed   : > { %1989 = dma.done.wait [#allocation4 + $0x1], 16 }
  0xee   : > { %1990 = vsyncadd [#allocation4 + $0x1], 4294967280 }
  0xef   : > { %1991 = dma.done.wait [#allocation4 + $0x2], 16 }
  0xf0   : > { %1992 = vsyncadd [#allocation4 + $0x2], 4294967280 }
  0xf1   : > { %1993 = dma.done.wait [#allocation4 + $0x3], 16 }
  0xf2   : > { %1994 = vsyncadd [#allocation4 + $0x3], 4294967280 }
  0xf3   : > { %1995 = dma.done.wait [#allocation4 + $0x4], 16 }
  0xf4   : > { %1996 = vsyncadd [#allocation4 + $0x4], 4294967280 }
  0xf5   : > { %1997 = dma.done.wait [#allocation4 + $0x5], 16 }
  0xf6   : > { %1998 = vsyncadd [#allocation4 + $0x5], 4294967280 }
  0xf7   : > { %1999 = dma.done.wait [#allocation4 + $0x6], 16 }
  0xf8   : > { %2000 = vsyncadd [#allocation4 + $0x6], 4294967280 }
  0xf9   : > { %2001 = dma.done.wait [#allocation4 + $0x7], 16 }
  0xfa   : > { %2002 = vsyncadd [#allocation4 + $0x7], 4294967280 }
  0xfb   : > { %2003 = dma.done.wait [#allocation4 + $0x8], 16 }
  0xfc   : > { %2004 = vsyncadd [#allocation4 + $0x8], 4294967280 }
  0xfd   : > { %2005 = dma.done.wait [#allocation4 + $0x9], 16 }
  0xfe   : > { %2006 = vsyncadd [#allocation4 + $0x9], 4294967280 }
  0xff   : > { %2007 = dma.done.wait [#allocation4 + $0xa], 16 }
 0x100   : > { %2008 = vsyncadd [#allocation4 + $0xa], 4294967280 }
 0x101   : > { %2009 = dma.done.wait [#allocation4 + $0xb], 16 }
 0x102   : > { %2010 = vsyncadd [#allocation4 + $0xb], 4294967280 }
 0x103   : > { %2011 = dma.done.wait [#allocation4 + $0xc], 16 }
 0x104   : > { %2012 = vsyncadd [#allocation4 + $0xc], 4294967280 }
 0x105   : > { %2013 = dma.done.wait [#allocation4 + $0xd], 16 }
 0x106   : > { %2014 = vsyncadd [#allocation4 + $0xd], 4294967280 }
 0x107   : > { %2015 = dma.done.wait [#allocation4 + $0xe], 16 }
 0x108   : > { %2016 = vsyncadd [#allocation4 + $0xe], 4294967280 }
 0x109   : > { %2017 = dma.done.wait [#allocation4 + $0xf], 16 }
 0x10a   : > { %2018 = vsyncadd [#allocation4 + $0xf], 4294967280  ;;  %v1136_v32 = vld [vmem:[#allocation2] sm:$0xff]  ;;  %v1137_v34 = vld [vmem:[#allocation2 + $0x8] sm:$0xff] }
 0x10b   : > { %v1138_v33 = vld [vmem:[%s2404_s1] sm:$0xff]  ;;  %v1139_v36 = vld [vmem:[%s2404_s1 + $0x8] sm:$0xff] }
 0x10c   : > { %v1140_v35 = vadd.f32 %v1138_v33, %v1136_v32  ;;  %v1141_v37 = vadd.f32 %v1139_v36, %v1137_v34  ;;  %v1742_v54 = vld [vmem:[%s2405_s2] ss:$0 sm:$0xff] }
 0x10d   : > { %v1743_v58 = vld [vmem:[%s2406_s3] ss:$0 sm:$0xff] }
 0x10e   : > { %1142 = vadd.xlane.f32.xlu0 %v1140_v35 }
 0x112   : > { %1144 = vadd.xlane.f32.xlu0 %v1141_v37 }
 0x19b   : > { %v1143_v38 = vpop.xlane.xlu0 %1142 }
 0x19c   : > { %v1147_v39 = vmul.f32 0.0078125, %v1143_v38 }
 0x19e   : > { %v1149_v40 = vsub.f32 %v1140_v35, %v1147_v39 }
 0x19f   : > { %v1145_v41 = vpop.xlane.xlu0 %1144 }
 0x1a0   : > { %v1148_v42 = vmul.f32 0.0078125, %v1145_v41  ;;  %v1151_v43 = vmul.f32 %v1149_v40, %v1149_v40 }
 0x1a2   : > { %v1150_v44 = vsub.f32 %v1141_v37, %v1148_v42  ;;  %1153 = vadd.xlane.f32.xlu1 %v1151_v43 }
 0x1a4   : > { %v1152_v45 = vmul.f32 %v1150_v44, %v1150_v44 }
 0x1a6   : > { %1155 = vadd.xlane.f32.xlu1 %v1152_v45 }
 0x22f   : > { %v1154_v46 = vpop.xlane.xlu1 %1153 }
 0x230   : > { %v1157_v47 = vmul.f32 0.0078125, %v1154_v46 }
 0x232   : > { %v1159_v48 = vadd.f32 1e-05, %v1157_v47 }
 0x233   : > { %v1156_v49 = vpop.xlane.xlu1 %1155 }
 0x234   : > { %1877 = vrsqrt.f32 %v1159_v48  ;;  %v1158_v50 = vmul.f32 0.0078125, %v1156_v49 }
 0x236   : > { %v1160_v51 = vadd.f32 1e-05, %v1158_v50 }
 0x238   : > { %1879 = vrsqrt.f32 %v1160_v51 }
 0x23e   : > { %v1878_v52 = vpop.eup %1877 }
 0x23f   : > { %v1163_v53 = vmul.f32 %v1878_v52, %v1149_v40 }
 0x241   : > { %v1172_v56 = vmul.f32 %v1742_v54, %v1163_v53 }
 0x242   : > { %v1880_v55 = vpop.eup %1879 }
 0x243   : > { %v1164_v57 = vmul.f32 %v1880_v55, %v1150_v44  ;;  %v1181_v60 = vadd.f32 %v1743_v58, %v1172_v56 }
 0x245   : > { %v1173_v59 = vmul.f32 %v1742_v54, %v1164_v57 }
 0x247   : > { %v1182_v61 = vadd.f32 %v1743_v58, %v1173_v59 }
 0x249   : > { %v1183_v62 = vpack.c.bf16 %v1182_v61, %v1181_v60 }
 0x24b   : > { %1184 = vst [vmem:[#allocation3] sm:$0xff] %v1183_v62 }
 0x24c PF: > { %v1881_v63 = vld [vmem:[%s2229_s15 + $0x4] ss:$8 sps:$4 sm:$0xff]   ;;  %v1883_v0 = vld [vmem:[%s2229_s15] ss:$8 sps:$4 sm:$0xff]   ;;  %v2064_v1 = vmov 0   ;;  %s1762_s25 = sshll.u32 %s2045_s30, 1 }
 0x24d   : > { %1314 = vmatprep.mubr.bf16.mxu0 %v2064_v1  ;;  %1282 = vmatprep.subr.bf16.mxu0 %v1881_v63  ;;  %v1884_v2 = vld [vmem:[%s2229_s15 + $0x14] ss:$8 sps:$4 sm:$0xff]   ;;  %v1886_v3 = vld [vmem:[%s2229_s15 + $0x10] ss:$8 sps:$4 sm:$0xff]   ;;  %v1887_v4 = vld [vmem:[%s2229_s15 + $0x24] ss:$8 sps:$4 sm:$0xff]  }
 0x24e   : > { %1283 = vmatpush1.bf16.msra.mxu0 %v1883_v0  ;;  %v1889_v5 = vld [vmem:[%s2229_s15 + $0x20] ss:$8 sps:$4 sm:$0xff]   ;;  %v1890_v6 = vld [vmem:[%s2229_s15 + $0x34] ss:$8 sps:$4 sm:$0xff]   ;;  %v1892_v7 = vld [vmem:[%s2229_s15 + $0x30] ss:$8 sps:$4 sm:$0xff]  }
 0x24f   : > { %1284 = vmatprep.subr.bf16.mxu0 %v1884_v2  ;;  %v1893_v8 = vld [vmem:[%s2229_s15 + $0x44] ss:$8 sps:$4 sm:$0xff]   ;;  %v1895_v9 = vld [vmem:[%s2229_s15 + $0x40] ss:$8 sps:$4 sm:$0xff]   ;;  %v1896_v10 = vld [vmem:[%s2229_s15 + $0x54] ss:$8 sps:$4 sm:$0xff]  }
 0x250   : > { %v1898_v11 = vld [vmem:[%s2229_s15 + $0x50] ss:$8 sps:$4 sm:$0xff]   ;;  %v1899_v12 = vld [vmem:[%s2229_s15 + $0x64] ss:$8 sps:$4 sm:$0xff]   ;;  %v1901_v13 = vld [vmem:[%s2229_s15 + $0x60] ss:$8 sps:$4 sm:$0xff]  }
 0x251   : > { %v1902_v14 = vld [vmem:[%s2229_s15 + $0x74] ss:$8 sps:$4 sm:$0xff]   ;;  %v1904_v15 = vld [vmem:[%s2229_s15 + $0x70] ss:$8 sps:$4 sm:$0xff]   ;;  %s1784_s11 = sshll.u32 %s2049_s7, 3  ;;  %s1346_s19 = sshll.u32 %s2231_s16, 4  ;;  %s2338_s19 = int_to_ptr.vmem [resolvable:$true] %s1346_s19 }
 0x252   : > { %1285 = vmatpush1.bf16.msra.mxu0 %v1886_v3  ;;  %v1185_v16 = vld [vmem:[#allocation3] sm:$0xff]  ;;  %s1343_s8 = sadd.s32 %s1784_s11, %s1762_s25  ;;  %s2425_s30 = sand.u32 1, %s2029_s27  }
 0x253   : > { %1286 = vmatprep.subr.bf16.mxu0 %v1887_v4  ;;  %s1764_s9 = sshll.u32 %s1343_s8, 7  ;;  %s2345_s7 = scalar_lea.sflag [#allocation9], %s2425_s30 }
 0x254   : > { %s2335_s12 = scalar_lea.hbm %s2409_s6, %s1764_s9  ;;  %s1917_s15 = scalar_lea.vmem %s2338_s19, 512 }
 0x255   : > { %p1918_p9 = scmp.ne.s32.totalorder %s2338_s19, %s1917_s15  ;;  %s2065_s17 = smov [#allocation8]  }
 0x256   : > { %1287 = vmatpush1.bf16.msra.mxu0 %v1889_v5  ;;  %s1921_s28 = sshll.u32 %s2065_s17, 4  ;;  %s1922_s28 = int_to_ptr.vmem [resolvable:$false] %s1921_s28 }
 0x257   : > { %1288 = vmatprep.subr.bf16.mxu0 %v1890_v6  ;;  %p1919_p10 = pnand %p1918_p9, %p2186_p1  ;;  %s1923_s18 = scalar_lea.vmem %s1922_s28, 1024 }
 0x258   : > { %p1924_p12 = scmp.lt.s32.totalorder %s2338_s19, %s1922_s28  ;;  %p1925_p13 = scmp.lt.s32.totalorder %s1923_s18, %s1917_s15 }
 0x259   : > { %p1920_p11 = pneg %p1919_p10 }
 0x25a   : > { %1289 = vmatpush1.bf16.msra.mxu0 %v1892_v7  ;;  %p1926_p0 = por %p1925_p13, %p1924_p12 }
 0x25b   : > { %1290 = vmatprep.subr.bf16.mxu0 %v1893_v8 }
 0x25c   : > { %p1927_p2 = pnand %p1926_p0, %p1920_p11 }
 0x25e   : > { %1291 = vmatpush1.bf16.msra.mxu0 %v1895_v9 }
 0x25f   : > { %1292 = vmatprep.subr.bf16.mxu0 %v1896_v10 }
 0x262   : > { %1293 = vmatpush1.bf16.msra.mxu0 %v1898_v11 }
 0x263   : > { %1294 = vmatprep.subr.bf16.mxu0 %v1899_v12 }
 0x266   : > { %1295 = vmatpush1.bf16.msra.mxu0 %v1901_v13 }
 0x267   : > { %1296 = vmatprep.subr.bf16.mxu0 %v1902_v14 }
 0x26a   : > { %1297 = vmatpush1.bf16.msra.mxu0 %v1904_v15 }
 0x26d   : > { %1315 = vmatmul.mubr.bf16.vlgmr.msra.gmra.mrb[0].mxu0 %v1185_v16 }
 0x340   : > { %v1316_v17 = vpop.f32.mrb[0].mxu0 }
 0x341   : > { %1325 = vst [vmem:[%s2231_s16] sm:$0xff] %v1316_v17  ;;  %v1318_v18 = vpop.f32.mrb[1].mxu0 }
 0x342   : > { %1326 = vst [vmem:[%s2231_s16 + $0x8] sm:$0xff] %v1318_v18  ;;  %v1320_v19 = vpop.f32.mrb[2].mxu0 }
 0x343   : > { %1327 = vst [vmem:[%s2231_s16 + $0x10] sm:$0xff] %v1320_v19  ;;  %v1322_v20 = vpop.f32.mrb[3].mxu0 }
 0x344   : > { %1328 = vst [vmem:[%s2231_s16 + $0x18] sm:$0xff] %v1322_v20 }
 0x345   : > { %1930 = shalt.err (!%p1927_p2)
}
 0x346   : > { %s1931_s16 = scalar_lea.hbm %s2335_s12, 512  ;;  %s1935_s13 = scalar_lea.hbm %s2409_s6, 2048 }
 0x347   : > { %p1932_p4 = scmp.ne.s32.totalorder %s2335_s12, %s1931_s16  ;;  %p1936_p7 = scmp.lt.u32.totalorder %s2335_s12, %s2409_s6 }
 0x348   : > { %p1937_p8 = scmp.lt.u32.totalorder %s1935_s13, %s1931_s16  ;;  %p1939_p10 = scmp.lt.u32.totalorder %s1931_s16, %s2335_s12 }
 0x349   : > { %p1933_p5 = pnand %p1932_p4, %p2186_p1 }
 0x34a   : > { %p1938_p9 = por %p1937_p8, %p1936_p7 }
 0x34b   : > { %p1934_p6 = pneg %p1933_p5 }
 0x34c   : > { %p1940_p11 = por %p1939_p10, %p1938_p9 }
 0x34e   : > { %p1941_p12 = pnand %p1940_p11, %p1934_p6 }
 0x350   : > { %1944 = shalt.err (!%p1941_p12)
}
 0x351   : > { %s2066_s8 = smov 256   ;;  %s2067_s9 = smov 512  }
 0x352   : > { %s2068_s4 = smov 16  }
 0x353   : > { %1785 = dma.vmem_to_hbm [thread:$0]  (%p2186_p1), %s2338_s19, 512, %s2335_s12, %s2345_s7, %s2066_s8, %s2067_s9, %s2068_s4  }
 0x354 PF: > { %p1791_p13 = scmp.ge.s32.totalorder %s2061_s10, 2  ;;  %s1361_s20 = sand.u32 1, %s2025_s26  }
 0x355   : > { %s1362_s30 = scalar_lea.sflag [#allocation9], %s1361_s20 }
 0x356   : > { %p1788_p0 = pnand %p1791_p13, %p2193_p3 }
 0x358   : > { %2020 = dma.done.wait (!%p1788_p0), %s1362_s30, 512  }
 0x359   : > { %2022 = vsyncadd (!%p1788_p0), %s1362_s30, 4294966784  ;;  %s25_s10 = sadd.s32 1, %s2061_s10   ;;  %s2426_s22 = sld [smem:[#allocation48_spill]] }
 0x35a   : > { %p22_p2 = scmp.ge.s32.totalorder %s25_s10, 6   ;;  %s2427_s30 = sld [smem:[#allocation44_spill]] }
 0x35b   : > { %s2428_s7 = sld [smem:[#allocation45_spill]]  ;;  %s2429_s8 = sld [smem:[#allocation46_spill]] }
 0x35c   : > { %s2430_s9 = sld [smem:[#allocation47_spill]]  ;;  %s2431_s26 = smov %s2029_s27 }
 0x35d   : > { %s2432_s27 = smov %s2033_s0  ;;  %s2433_s0 = smov %s2191_s23 }
 0x35e   : > { %s2434_s28 = smov %s2041_s29  ;;  %24 = sbr.rel (!%p22_p2) target bundleno = 21 (0x15), region = 819 }
 0x35f   : > { %s2435_s29 = smov %s2426_s22 }
 0x365   :  { %1367 = vsyncpa [#allocation9], 1 }
 0x366   :  { %1369 = vsyncpa [#allocation9 + $0x1], 1 }
 0x367   :  { %1370 = vsyncmov [#allocation4] }
 0x36a   :  { %s1371_s24 = vpop.sfrf %1370 }
 0x36b   :  { %p1767_p1 = scmp.ne.s32.totalorder %s1371_s24, 0 }
 0x36d   :  { %1375 = shalt.err (%p1767_p1)  }
 0x36e   :  { %1377 = vsyncmov [#allocation4 + $0x1] }
 0x371   :  { %s1378_s23 = vpop.sfrf %1377 }
 0x372   :  { %p1768_p3 = scmp.ne.s32.totalorder %s1378_s23, 0 }
 0x374   :  { %1382 = shalt.err (%p1768_p3)  }
 0x375   :  { %1384 = vsyncmov [#allocation4 + $0x2] }
 0x378   :  { %s1385_s19 = vpop.sfrf %1384 }
 0x379   :  { %p1769_p4 = scmp.ne.s32.totalorder %s1385_s19, 0 }
 0x37b   :  { %1389 = shalt.err (%p1769_p4)  }
 0x37c   :  { %1391 = vsyncmov [#allocation4 + $0x3] }
 0x37f   :  { %s1392_s12 = vpop.sfrf %1391 }
 0x380   :  { %p1770_p5 = scmp.ne.s32.totalorder %s1392_s12, 0 }
 0x382   :  { %1396 = shalt.err (%p1770_p5)  }
 0x383   :  { %1398 = vsyncmov [#allocation4 + $0x4] }
 0x386   :  { %s1399_s10 = vpop.sfrf %1398 }
 0x387   :  { %p1771_p6 = scmp.ne.s32.totalorder %s1399_s10, 0 }
 0x389   :  { %1403 = shalt.err (%p1771_p6)  }
 0x38a   :  { %1405 = vsyncmov [#allocation4 + $0x5] }
 0x38d   :  { %s1406_s1 = vpop.sfrf %1405 }
 0x38e   :  { %p1772_p7 = scmp.ne.s32.totalorder %s1406_s1, 0 }
 0x390   :  { %1410 = shalt.err (%p1772_p7)  }
 0x391   :  { %1412 = vsyncmov [#allocation4 + $0x6] }
 0x394   :  { %s1413_s2 = vpop.sfrf %1412 }
 0x395   :  { %p1773_p8 = scmp.ne.s32.totalorder %s1413_s2, 0 }
 0x397   :  { %1417 = shalt.err (%p1773_p8)  }
 0x398   :  { %1419 = vsyncmov [#allocation4 + $0x7] }
 0x39b   :  { %s1420_s3 = vpop.sfrf %1419 }
 0x39c   :  { %p1774_p9 = scmp.ne.s32.totalorder %s1420_s3, 0 }
 0x39e   :  { %1424 = shalt.err (%p1774_p9)  }
 0x39f   :  { %1426 = vsyncmov [#allocation4 + $0x8] }
 0x3a2   :  { %s1427_s5 = vpop.sfrf %1426 }
 0x3a3   :  { %p1775_p10 = scmp.ne.s32.totalorder %s1427_s5, 0 }
 0x3a5   :  { %1431 = shalt.err (%p1775_p10)  }
 0x3a6   :  { %1433 = vsyncmov [#allocation4 + $0x9] }
 0x3a9   :  { %s1434_s6 = vpop.sfrf %1433 }
 0x3aa   :  { %p1776_p11 = scmp.ne.s32.totalorder %s1434_s6, 0 }
 0x3ac   :  { %1438 = shalt.err (%p1776_p11)  }
 0x3ad   :  { %1440 = vsyncmov [#allocation4 + $0xa] }
 0x3b0   :  { %s1441_s26 = vpop.sfrf %1440 }
 0x3b1   :  { %p1777_p12 = scmp.ne.s32.totalorder %s1441_s26, 0 }
 0x3b3   :  { %1445 = shalt.err (%p1777_p12)  }
 0x3b4   :  { %1447 = vsyncmov [#allocation4 + $0xb] }
 0x3b7   :  { %s1448_s27 = vpop.sfrf %1447 }
 0x3b8   :  { %p1778_p13 = scmp.ne.s32.totalorder %s1448_s27, 0 }
 0x3ba   :  { %1452 = shalt.err (%p1778_p13)  }
 0x3bb   :  { %1454 = vsyncmov [#allocation4 + $0xc] }
 0x3be   :  { %s1455_s0 = vpop.sfrf %1454 }
 0x3bf   :  { %p1779_p0 = scmp.ne.s32.totalorder %s1455_s0, 0 }
 0x3c1   :  { %1459 = shalt.err (%p1779_p0)  }
 0x3c2   :  { %1461 = vsyncmov [#allocation4 + $0xd] }
 0x3c5   :  { %s1462_s29 = vpop.sfrf %1461 }
 0x3c6   :  { %p1780_p2 = scmp.ne.s32.totalorder %s1462_s29, 0 }
 0x3c8   :  { %1466 = shalt.err (%p1780_p2)  }
 0x3c9   :  { %1468 = vsyncmov [#allocation4 + $0xe] }
 0x3cc   :  { %s1469_s7 = vpop.sfrf %1468 }
 0x3cd   :  { %p1781_p1 = scmp.ne.s32.totalorder %s1469_s7, 0 }
 0x3cf   :  { %1473 = shalt.err (%p1781_p1)  }
 0x3d0   :  { %1475 = vsyncmov [#allocation4 + $0xf] }
 0x3d3   :  { %s1476_s15 = vpop.sfrf %1475 }
 0x3d4   :  { %p1782_p3 = scmp.ne.s32.totalorder %s1476_s15, 0 }
 0x3d6   :  { %1480 = shalt.err (%p1782_p3)  }

</bundles_post_ra>
